<compile_context>
chip_gen: v7x
topology: tpu7x:2x2x1
jax: 0.10.0
libtpu: 0.0.40
codegen_flags: <defaults>
</compile_context>

<pallas_src>
import jax
import jax.numpy as jnp
from jax.experimental import pallas as pl
from jax.experimental.pallas import tpu as pltpu

LATENT = 20


def _round_up(n, m):
    return ((n + m - 1) // m) * m


def _vae_kernel(x_ref,
                w1_ref, b1_ref, w2_ref, b2_ref,
                wmulv_ref, bmulv_ref,
                eps_ref,
                wd1_ref, bd1_ref, wd2_ref, bd2_ref, wd3_ref, bd3_ref,
                recon_ref, mulv_ref):
    def dense(a, w_ref, b_ref):
        # bf16 x bf16 on the MXU, f32 accumulation, f32 bias add.
        return jnp.dot(a.astype(jnp.bfloat16), w_ref[...],
                       preferred_element_type=jnp.float32) + b_ref[...]

    x = x_ref[...]

    # ---- encoder: Linear(784,256)+ReLU -> Linear(256,64)+ReLU -------------
    h = jnp.maximum(dense(x, w1_ref, b1_ref), 0.0)
    h = jnp.maximum(dense(h, w2_ref, b2_ref), 0.0)

    # ---- fused heads: [mu || log_var] = h @ [Wmu || Wlv] --------------------
    mulv = dense(h, wmulv_ref, bmulv_ref)          # (tm, 2*LATENT)
    mu = mulv[:, :LATENT]
    logvar = mulv[:, LATENT:]

    # ---- reparameterize: z = mu + eps * exp(0.5 * logvar) ------------------
    # (eps ~ Uniform[0,1) to match torch.rand_like; generated outside kernel)
    z = mu + eps_ref[...] * jnp.exp(0.5 * logvar)

    # ---- decoder: Linear(20,64)+ReLU -> Linear(64,256)+ReLU ->
    #               Linear(256,784)+Sigmoid ----------------------------------
    d = jnp.maximum(dense(z, wd1_ref, bd1_ref), 0.0)
    d = jnp.maximum(dense(d, wd2_ref, bd2_ref), 0.0)
    logits = dense(d, wd3_ref, bd3_ref)

    recon_ref[...] = jax.nn.sigmoid(logits)
    mulv_ref[...] = mulv


def vae_forward(x, packed_params, eps, tile_m=128):
    """x: (B, 1, 28, 28) float32. Returns (recon (B,784), mu (B,20), logvar (B,20))."""
    B = x.shape[0]
    x_flat = x.reshape(B, -1).astype(jnp.float32)   # (B, 784)
    eps = eps.astype(jnp.float32)

    # Batch tile: multiple of 8 sublanes, up to tile_m rows per grid step.
    tm = min(tile_m, _round_up(B, 8))
    B_pad = _round_up(B, tm)
    if B_pad != B:
        pad = B_pad - B
        x_flat = jnp.pad(x_flat, ((0, pad), (0, 0)))
        eps = jnp.pad(eps, ((0, pad), (0, 0)))

    grid = (B_pad // tm,)

    (w1, b1, w2, b2, wmulv, bmulv, wd1, bd1, wd2, bd2, wd3, bd3) = packed_params

    def row_spec(n):
        # Per-batch-tile blocks (x, eps, outputs).
        return pl.BlockSpec((tm, n), lambda i: (i, 0))

    def const_spec(arr):
        # Whole array, constant index_map -> stays resident across grid steps.
        return pl.BlockSpec(arr.shape, lambda i: (0, 0))

    in_specs = [
        row_spec(784),                              # x
        const_spec(w1), const_spec(b1),
        const_spec(w2), const_spec(b2),
        const_spec(wmulv), const_spec(bmulv),
        row_spec(LATENT),                           # eps
        const_spec(wd1), const_spec(bd1),
        const_spec(wd2), const_spec(bd2),
        const_spec(wd3), const_spec(bd3),
    ]
    out_specs = (row_spec(784), row_spec(2 * LATENT))
    out_shapes = (
        jax.ShapeDtypeStruct((B_pad, 784), jnp.float32),        # reconstruction
        jax.ShapeDtypeStruct((B_pad, 2 * LATENT), jnp.float32),  # packed [mu||logvar]
    )

    recon, mulv = pl.pallas_call(
        _vae_kernel,
        grid=grid,
        in_specs=in_specs,
        out_specs=out_specs,
        out_shape=out_shapes,
        compiler_params=pltpu.CompilerParams(
            dimension_semantics=("parallel",)),
    )(x_flat,
      w1, b1, w2, b2, wmulv, bmulv,
      eps,
      wd1, bd1, wd2, bd2, wd3, bd3)

    recon = recon[:B]
    mu = mulv[:B, :LATENT]
    logvar = mulv[:B, LATENT:]
    return recon, mu, logvar


def init_params(key):
    """Deterministic init, PyTorch-style uniform(-1/sqrt(fan_in), 1/sqrt(fan_in)).
    Weights stored as (in_features, out_features); biases as (1, out). All f32."""
    dims = [
        (784, 256),    # encoder.0
        (256, 64),     # encoder.2
        (64, LATENT),  # fc_mu
        (64, LATENT),  # fc_log_var
        (LATENT, 64),  # decoder.0
        (64, 256),     # decoder.2
        (256, 784),    # decoder.4
    ]
    params = []
    for (fan_in, fan_out) in dims:
        key, kw, kb = jax.random.split(key, 3)
        bound = 1.0 / jnp.sqrt(float(fan_in))
        w = jax.random.uniform(kw, (fan_in, fan_out), jnp.float32, -bound, bound)
        b = jax.random.uniform(kb, (1, fan_out), jnp.float32, -bound, bound)
        params.extend([w, b])
    return tuple(params)


def pack_params(params):
    """Fuse mu/log_var heads and cast weights to bf16 (biases stay f32)."""
    (w1, b1, w2, b2, wmu, bmu, wlv, blv, wd1, bd1, wd2, bd2, wd3, bd3) = params
    wmulv = jnp.concatenate([wmu, wlv], axis=1)     # (64, 2*LATENT)
    bmulv = jnp.concatenate([bmu, blv], axis=1)     # (1, 2*LATENT)
    to_bf16 = lambda w: w.astype(jnp.bfloat16)
    return (to_bf16(w1), b1, to_bf16(w2), b2,
            to_bf16(wmulv), bmulv,
            to_bf16(wd1), bd1, to_bf16(wd2), bd2, to_bf16(wd3), bd3)


def reference_forward(x, packed_params, eps):
    """Pure-JAX reference mirroring the kernel's bf16-weight math."""
    (w1, b1, w2, b2, wmulv, bmulv, wd1, bd1, wd2, bd2, wd3, bd3) = packed_params

    def dense(a, w, b):
        return jnp.dot(a.astype(jnp.bfloat16), w,
                       preferred_element_type=jnp.float32) + b

    h = x.reshape(x.shape[0], -1).astype(jnp.float32)
    h = jnp.maximum(dense(h, w1, b1), 0.0)
    h = jnp.maximum(dense(h, w2, b2), 0.0)
    mulv = dense(h, wmulv, bmulv)
    mu, logvar = mulv[:, :LATENT], mulv[:, LATENT:]
    z = mu + eps * jnp.exp(0.5 * logvar)
    d = jnp.maximum(dense(z, wd1, bd1), 0.0)
    d = jnp.maximum(dense(d, wd2, bd2), 0.0)
    recon = jax.nn.sigmoid(dense(d, wd3, bd3))
    return recon, mu, logvar


if __name__ == "__main__":
    key = jax.random.PRNGKey(0)
    k_param, k_x, k_eps = jax.random.split(key, 3)

    B = 8
    x = jax.random.uniform(k_x, (B, 1, 28, 28), jnp.float32)    # MNIST-like input
    # torch.rand_like -> Uniform[0,1); matches the original module's reparameterize.
    eps = jax.random.uniform(k_eps, (B, LATENT), jnp.float32)

    params = init_params(k_param)
    packed = pack_params(params)

    recon, mu, logvar = vae_forward(x, packed, eps)
    jax.block_until_ready((recon, mu, logvar))

    # sanity check against pure-JAX reference (same bf16-weight math)
    r_ref, mu_ref, lv_ref = reference_forward(x, packed, eps)
    assert recon.shape == (B, 784) and mu.shape == (B, LATENT) and logvar.shape == (B, LATENT)
    assert jnp.allclose(recon, r_ref, atol=1e-3, rtol=1e-3)
    assert jnp.allclose(mu, mu_ref, atol=1e-3, rtol=1e-3)
    assert jnp.allclose(logvar, lv_ref, atol=1e-3, rtol=1e-3)

    print("KERNEL_OK")
</pallas_src>

<mosaic_0001>
module attributes {stable_mosaic.version = 11 : i64} {
  func.func @_vae_kernel(%arg0: i32, %arg1: memref<8x784xf32, #tpu.memory_space<vmem>>, %arg2: memref<784x256xbf16, #tpu.memory_space<vmem>>, %arg3: memref<1x256xf32, #tpu.memory_space<vmem>>, %arg4: memref<256x64xbf16, #tpu.memory_space<vmem>>, %arg5: memref<1x64xf32, #tpu.memory_space<vmem>>, %arg6: memref<64x40xbf16, #tpu.memory_space<vmem>>, %arg7: memref<1x40xf32, #tpu.memory_space<vmem>>, %arg8: memref<8x20xf32, #tpu.memory_space<vmem>>, %arg9: memref<20x64xbf16, #tpu.memory_space<vmem>>, %arg10: memref<1x64xf32, #tpu.memory_space<vmem>>, %arg11: memref<64x256xbf16, #tpu.memory_space<vmem>>, %arg12: memref<1x256xf32, #tpu.memory_space<vmem>>, %arg13: memref<256x784xbf16, #tpu.memory_space<vmem>>, %arg14: memref<1x784xf32, #tpu.memory_space<vmem>>, %arg15: memref<8x784xf32, #tpu.memory_space<vmem>>, %arg16: memref<8x40xf32, #tpu.memory_space<vmem>>) attributes {dimension_semantics = [#tpu.dimension_semantics<parallel>], iteration_bounds = array<i64: 1>, scalar_prefetch = 0 : i64, scratch_operands = 0 : i64, tpu.core_type = #tpu.core_type<tc>, window_params = [{transform_indices = @transform_0, window_bounds = array<i64: 8, 784>}, {pipeline_mode = #tpu.pipeline_mode<synchronous>, transform_indices = @transform_1, window_bounds = array<i64: 784, 256>}, {pipeline_mode = #tpu.pipeline_mode<synchronous>, transform_indices = @transform_2, window_bounds = array<i64: 1, 256>}, {pipeline_mode = #tpu.pipeline_mode<synchronous>, transform_indices = @transform_3, window_bounds = array<i64: 256, 64>}, {pipeline_mode = #tpu.pipeline_mode<synchronous>, transform_indices = @transform_4, window_bounds = array<i64: 1, 64>}, {pipeline_mode = #tpu.pipeline_mode<synchronous>, transform_indices = @transform_5, window_bounds = array<i64: 64, 40>}, {pipeline_mode = #tpu.pipeline_mode<synchronous>, transform_indices = @transform_6, window_bounds = array<i64: 1, 40>}, {transform_indices = @transform_7, window_bounds = array<i64: 8, 20>}, {pipeline_mode = #tpu.pipeline_mode<synchronous>, transform_indices = @transform_8, window_bounds = array<i64: 20, 64>}, {pipeline_mode = #tpu.pipeline_mode<synchronous>, transform_indices = @transform_9, window_bounds = array<i64: 1, 64>}, {pipeline_mode = #tpu.pipeline_mode<synchronous>, transform_indices = @transform_10, window_bounds = array<i64: 64, 256>}, {pipeline_mode = #tpu.pipeline_mode<synchronous>, transform_indices = @transform_11, window_bounds = array<i64: 1, 256>}, {pipeline_mode = #tpu.pipeline_mode<synchronous>, transform_indices = @transform_12, window_bounds = array<i64: 256, 784>}, {pipeline_mode = #tpu.pipeline_mode<synchronous>, transform_indices = @transform_13, window_bounds = array<i64: 1, 784>}, {transform_indices = @transform_14, window_bounds = array<i64: 8, 784>}, {transform_indices = @transform_15, window_bounds = array<i64: 8, 40>}]} {
    %c0 = arith.constant 0 : index
    %c0_0 = arith.constant 0 : index
    %0 = vector.load %arg1[%c0, %c0_0] : memref<8x784xf32, #tpu.memory_space<vmem>>, vector<8x784xf32>
    %1 = arith.truncf %0 : vector<8x784xf32> to vector<8x784xbf16>
    %c0_1 = arith.constant 0 : index
    %c0_2 = arith.constant 0 : index
    %2 = vector.load %arg2[%c0_1, %c0_2] : memref<784x256xbf16, #tpu.memory_space<vmem>>, vector<784x256xbf16>
    %cst = arith.constant dense<0.000000e+00> : vector<8x256xf32>
    %3 = tpu.matmul %1, %2, %cst {dimension_numbers = #tpu.dot_dimension_numbers<[1], [0], [0], [1], [0, 0, 1, 1], [], []>} : vector<8x784xbf16>, vector<784x256xbf16>, vector<8x256xf32> -> vector<8x256xf32>
    %c0_3 = arith.constant 0 : index
    %c0_4 = arith.constant 0 : index
    %4 = vector.load %arg3[%c0_3, %c0_4] : memref<1x256xf32, #tpu.memory_space<vmem>>, vector<1x256xf32>
    %5 = vector.broadcast %4 : vector<1x256xf32> to vector<8x256xf32>
    %6 = arith.addf %3, %5 : vector<8x256xf32>
    %cst_5 = arith.constant 0.000000e+00 : f32
    %7 = vector.broadcast %cst_5 : f32 to vector<8x256xf32>
    %8 = arith.maximumf %6, %7 : vector<8x256xf32>
    %9 = arith.truncf %8 : vector<8x256xf32> to vector<8x256xbf16>
    %c0_6 = arith.constant 0 : index
    %c0_7 = arith.constant 0 : index
    %10 = vector.load %arg4[%c0_6, %c0_7] : memref<256x64xbf16, #tpu.memory_space<vmem>>, vector<256x64xbf16>
    %cst_8 = arith.constant dense<0.000000e+00> : vector<8x64xf32>
    %11 = tpu.matmul %9, %10, %cst_8 {dimension_numbers = #tpu.dot_dimension_numbers<[1], [0], [0], [1], [0, 0, 1, 1], [], []>} : vector<8x256xbf16>, vector<256x64xbf16>, vector<8x64xf32> -> vector<8x64xf32>
    %c0_9 = arith.constant 0 : index
    %c0_10 = arith.constant 0 : index
    %12 = vector.load %arg5[%c0_9, %c0_10] : memref<1x64xf32, #tpu.memory_space<vmem>>, vector<1x64xf32>
    %13 = vector.broadcast %12 : vector<1x64xf32> to vector<8x64xf32>
    %14 = arith.addf %11, %13 : vector<8x64xf32>
    %cst_11 = arith.constant 0.000000e+00 : f32
    %15 = vector.broadcast %cst_11 : f32 to vector<8x64xf32>
    %16 = arith.maximumf %14, %15 : vector<8x64xf32>
    %17 = arith.truncf %16 : vector<8x64xf32> to vector<8x64xbf16>
    %c0_12 = arith.constant 0 : index
    %c0_13 = arith.constant 0 : index
    %18 = vector.load %arg6[%c0_12, %c0_13] : memref<64x40xbf16, #tpu.memory_space<vmem>>, vector<64x40xbf16>
    %cst_14 = arith.constant dense<0.000000e+00> : vector<8x40xf32>
    %19 = tpu.matmul %17, %18, %cst_14 {dimension_numbers = #tpu.dot_dimension_numbers<[1], [0], [0], [1], [0, 0, 1, 1], [], []>} : vector<8x64xbf16>, vector<64x40xbf16>, vector<8x40xf32> -> vector<8x40xf32>
    %c0_15 = arith.constant 0 : index
    %c0_16 = arith.constant 0 : index
    %20 = vector.load %arg7[%c0_15, %c0_16] : memref<1x40xf32, #tpu.memory_space<vmem>>, vector<1x40xf32>
    %21 = vector.broadcast %20 : vector<1x40xf32> to vector<8x40xf32>
    %22 = arith.addf %19, %21 : vector<8x40xf32>
    %23 = vector.extract_strided_slice %22 {offsets = [0, 0], sizes = [8, 20], strides = [1, 1]} : vector<8x40xf32> to vector<8x20xf32>
    %24 = vector.extract_strided_slice %22 {offsets = [0, 20], sizes = [8, 20], strides = [1, 1]} : vector<8x40xf32> to vector<8x20xf32>
    %c0_17 = arith.constant 0 : index
    %c0_18 = arith.constant 0 : index
    %25 = vector.load %arg8[%c0_17, %c0_18] : memref<8x20xf32, #tpu.memory_space<vmem>>, vector<8x20xf32>
    %cst_19 = arith.constant 5.000000e-01 : f32
    %26 = vector.broadcast %cst_19 : f32 to vector<8x20xf32>
    %27 = arith.mulf %26, %24 : vector<8x20xf32>
    %28 = math.exp %27 : vector<8x20xf32>
    %29 = arith.mulf %25, %28 : vector<8x20xf32>
    %30 = arith.addf %23, %29 : vector<8x20xf32>
    %31 = arith.truncf %30 : vector<8x20xf32> to vector<8x20xbf16>
    %c0_20 = arith.constant 0 : index
    %c0_21 = arith.constant 0 : index
    %32 = vector.load %arg9[%c0_20, %c0_21] : memref<20x64xbf16, #tpu.memory_space<vmem>>, vector<20x64xbf16>
    %cst_22 = arith.constant dense<0.000000e+00> : vector<8x64xf32>
    %33 = tpu.matmul %31, %32, %cst_22 {dimension_numbers = #tpu.dot_dimension_numbers<[1], [0], [0], [1], [0, 0, 1, 1], [], []>} : vector<8x20xbf16>, vector<20x64xbf16>, vector<8x64xf32> -> vector<8x64xf32>
    %c0_23 = arith.constant 0 : index
    %c0_24 = arith.constant 0 : index
    %34 = vector.load %arg10[%c0_23, %c0_24] : memref<1x64xf32, #tpu.memory_space<vmem>>, vector<1x64xf32>
    %35 = vector.broadcast %34 : vector<1x64xf32> to vector<8x64xf32>
    %36 = arith.addf %33, %35 : vector<8x64xf32>
    %cst_25 = arith.constant 0.000000e+00 : f32
    %37 = vector.broadcast %cst_25 : f32 to vector<8x64xf32>
    %38 = arith.maximumf %36, %37 : vector<8x64xf32>
    %39 = arith.truncf %38 : vector<8x64xf32> to vector<8x64xbf16>
    %c0_26 = arith.constant 0 : index
    %c0_27 = arith.constant 0 : index
    %40 = vector.load %arg11[%c0_26, %c0_27] : memref<64x256xbf16, #tpu.memory_space<vmem>>, vector<64x256xbf16>
    %cst_28 = arith.constant dense<0.000000e+00> : vector<8x256xf32>
    %41 = tpu.matmul %39, %40, %cst_28 {dimension_numbers = #tpu.dot_dimension_numbers<[1], [0], [0], [1], [0, 0, 1, 1], [], []>} : vector<8x64xbf16>, vector<64x256xbf16>, vector<8x256xf32> -> vector<8x256xf32>
    %c0_29 = arith.constant 0 : index
    %c0_30 = arith.constant 0 : index
    %42 = vector.load %arg12[%c0_29, %c0_30] : memref<1x256xf32, #tpu.memory_space<vmem>>, vector<1x256xf32>
    %43 = vector.broadcast %42 : vector<1x256xf32> to vector<8x256xf32>
    %44 = arith.addf %41, %43 : vector<8x256xf32>
    %cst_31 = arith.constant 0.000000e+00 : f32
    %45 = vector.broadcast %cst_31 : f32 to vector<8x256xf32>
    %46 = arith.maximumf %44, %45 : vector<8x256xf32>
    %47 = arith.truncf %46 : vector<8x256xf32> to vector<8x256xbf16>
    %c0_32 = arith.constant 0 : index
    %c0_33 = arith.constant 0 : index
    %48 = vector.load %arg13[%c0_32, %c0_33] : memref<256x784xbf16, #tpu.memory_space<vmem>>, vector<256x784xbf16>
    %cst_34 = arith.constant dense<0.000000e+00> : vector<8x784xf32>
    %49 = tpu.matmul %47, %48, %cst_34 {dimension_numbers = #tpu.dot_dimension_numbers<[1], [0], [0], [1], [0, 0, 1, 1], [], []>} : vector<8x256xbf16>, vector<256x784xbf16>, vector<8x784xf32> -> vector<8x784xf32>
    %c0_35 = arith.constant 0 : index
    %c0_36 = arith.constant 0 : index
    %50 = vector.load %arg14[%c0_35, %c0_36] : memref<1x784xf32, #tpu.memory_space<vmem>>, vector<1x784xf32>
    %51 = vector.broadcast %50 : vector<1x784xf32> to vector<8x784xf32>
    %52 = arith.addf %49, %51 : vector<8x784xf32>
    %53 = arith.negf %52 : vector<8x784xf32>
    %54 = math.exp %53 : vector<8x784xf32>
    %cst_37 = arith.constant 1.000000e+00 : f32
    %55 = vector.broadcast %cst_37 : f32 to vector<8x784xf32>
    %56 = arith.addf %55, %54 : vector<8x784xf32>
    %57 = arith.divf %55, %56 : vector<8x784xf32>
    %c0_38 = arith.constant 0 : index
    %c0_39 = arith.constant 0 : index
    %58 = vector.load %arg15[%c0_38, %c0_39] : memref<8x784xf32, #tpu.memory_space<vmem>>, vector<8x784xf32>
    tpu.vector_store %arg15[%c0_38, %c0_39], %57 {strides = array<i32>} : memref<8x784xf32, #tpu.memory_space<vmem>>, vector<8x784xf32>,
    %c0_40 = arith.constant 0 : index
    %c0_41 = arith.constant 0 : index
    %59 = vector.load %arg16[%c0_40, %c0_41] : memref<8x40xf32, #tpu.memory_space<vmem>>, vector<8x40xf32>
    tpu.vector_store %arg16[%c0_40, %c0_41], %22 {strides = array<i32>} : memref<8x40xf32, #tpu.memory_space<vmem>>, vector<8x40xf32>,
    return
  }
  func.func @transform_0(%arg0: i32) -> (i32, i32) {
    %c0_i32 = arith.constant 0 : i32
    %c0_i32_0 = arith.constant 0 : i32
    return %arg0, %c0_i32 : i32, i32
  }
  func.func @transform_1(%arg0: i32) -> (i32, i32) {
    %c0_i32 = arith.constant 0 : i32
    %c0_i32_0 = arith.constant 0 : i32
    %c0_i32_1 = arith.constant 0 : i32
    return %c0_i32, %c0_i32_0 : i32, i32
  }
  func.func @transform_2(%arg0: i32) -> (i32, i32) {
    %c0_i32 = arith.constant 0 : i32
    %c0_i32_0 = arith.constant 0 : i32
    %c0_i32_1 = arith.constant 0 : i32
    return %c0_i32, %c0_i32_0 : i32, i32
  }
  func.func @transform_3(%arg0: i32) -> (i32, i32) {
    %c0_i32 = arith.constant 0 : i32
    %c0_i32_0 = arith.constant 0 : i32
    %c0_i32_1 = arith.constant 0 : i32
    return %c0_i32, %c0_i32_0 : i32, i32
  }
  func.func @transform_4(%arg0: i32) -> (i32, i32) {
    %c0_i32 = arith.constant 0 : i32
    %c0_i32_0 = arith.constant 0 : i32
    %c0_i32_1 = arith.constant 0 : i32
    return %c0_i32, %c0_i32_0 : i32, i32
  }
  func.func @transform_5(%arg0: i32) -> (i32, i32) {
    %c0_i32 = arith.constant 0 : i32
    %c0_i32_0 = arith.constant 0 : i32
    %c0_i32_1 = arith.constant 0 : i32
    return %c0_i32, %c0_i32_0 : i32, i32
  }
  func.func @transform_6(%arg0: i32) -> (i32, i32) {
    %c0_i32 = arith.constant 0 : i32
    %c0_i32_0 = arith.constant 0 : i32
    %c0_i32_1 = arith.constant 0 : i32
    return %c0_i32, %c0_i32_0 : i32, i32
  }
  func.func @transform_7(%arg0: i32) -> (i32, i32) {
    %c0_i32 = arith.constant 0 : i32
    %c0_i32_0 = arith.constant 0 : i32
    return %arg0, %c0_i32 : i32, i32
  }
  func.func @transform_8(%arg0: i32) -> (i32, i32) {
    %c0_i32 = arith.constant 0 : i32
    %c0_i32_0 = arith.constant 0 : i32
    %c0_i32_1 = arith.constant 0 : i32
    return %c0_i32, %c0_i32_0 : i32, i32
  }
  func.func @transform_9(%arg0: i32) -> (i32, i32) {
    %c0_i32 = arith.constant 0 : i32
    %c0_i32_0 = arith.constant 0 : i32
    %c0_i32_1 = arith.constant 0 : i32
    return %c0_i32, %c0_i32_0 : i32, i32
  }
  func.func @transform_10(%arg0: i32) -> (i32, i32) {
    %c0_i32 = arith.constant 0 : i32
    %c0_i32_0 = arith.constant 0 : i32
    %c0_i32_1 = arith.constant 0 : i32
    return %c0_i32, %c0_i32_0 : i32, i32
  }
  func.func @transform_11(%arg0: i32) -> (i32, i32) {
    %c0_i32 = arith.constant 0 : i32
    %c0_i32_0 = arith.constant 0 : i32
    %c0_i32_1 = arith.constant 0 : i32
    return %c0_i32, %c0_i32_0 : i32, i32
  }
  func.func @transform_12(%arg0: i32) -> (i32, i32) {
    %c0_i32 = arith.constant 0 : i32
    %c0_i32_0 = arith.constant 0 : i32
    %c0_i32_1 = arith.constant 0 : i32
    return %c0_i32, %c0_i32_0 : i32, i32
  }
  func.func @transform_13(%arg0: i32) -> (i32, i32) {
    %c0_i32 = arith.constant 0 : i32
    %c0_i32_0 = arith.constant 0 : i32
    %c0_i32_1 = arith.constant 0 : i32
    return %c0_i32, %c0_i32_0 : i32, i32
  }
  func.func @transform_14(%arg0: i32) -> (i32, i32) {
    %c0_i32 = arith.constant 0 : i32
    %c0_i32_0 = arith.constant 0 : i32
    return %arg0, %c0_i32 : i32, i32
  }
  func.func @transform_15(%arg0: i32) -> (i32, i32) {
    %c0_i32 = arith.constant 0 : i32
    %c0_i32_0 = arith.constant 0 : i32
    return %arg0, %c0_i32 : i32, i32
  }
}

</mosaic_0001>

<bundles_post_ra>
// kernel: tpu_custom_call.1
= control target key start
LH: loop header
LB: loop body
LE: loop exit
PB: predicated region body
PF: predicated region fallthrough
CT: control target
= control target key end

     0   :  { %21 = vsyncpa [#allocation3], 0  ;;  %v3032_v42 = vmov 0   ;;  %vm666_vm0 = vcmask 130048   ;;  %s3950_s0 = inlined_call_operand.vmem [shape: f32[8,784], index: 0, kind: input, shape index: {}]   ;;  %s3951_s1 = inlined_call_operand.vmem [shape: bf16[784,256], index: 1, kind: input, shape index: {}]   ;;  %s3952_s2 = inlined_call_operand.vmem [shape: f32[1,256], index: 2, kind: input, shape index: {}]   ;;  %s3953_s3 = inlined_call_operand.vmem [shape: bf16[256,64], index: 3, kind: input, shape index: {}]   ;;  %s3954_s4 = inlined_call_operand.vmem [shape: f32[1,64], index: 4, kind: input, shape index: {}]   ;;  %s3955_s5 = inlined_call_operand.vmem [shape: bf16[64,40], index: 5, kind: input, shape index: {}]   ;;  %s3956_s6 = inlined_call_operand.vmem [shape: f32[1,40], index: 6, kind: input, shape index: {}]   ;;  %s3957_s7 = inlined_call_operand.vmem [shape: f32[8,20], index: 7, kind: input, shape index: {}]   ;;  %s3958_s8 = inlined_call_operand.vmem [shape: bf16[20,64], index: 8, kind: input, shape index: {}]   ;;  %s3959_s9 = inlined_call_operand.vmem [shape: f32[1,64], index: 9, kind: input, shape index: {}]   ;;  %s3960_s10 = inlined_call_operand.vmem [shape: bf16[64,256], index: 10, kind: input, shape index: {}]   ;;  %s3961_s11 = inlined_call_operand.vmem [shape: f32[1,256], index: 11, kind: input, shape index: {}]   ;;  %s3962_s12 = inlined_call_operand.vmem [shape: bf16[256,784], index: 12, kind: input, shape index: {}]   ;;  %s3963_s13 = inlined_call_operand.vmem [shape: f32[1,784], index: 13, kind: input, shape index: {}]   ;;  %s3964_s14 = inlined_call_operand.hbm [shape: f32[8,784], index: 14, kind: output, shape index: {0}]   ;;  %s3965_s15 = inlined_call_operand.hbm [shape: f32[8,40], index: 15, kind: output, shape index: {1}]  }
   0x1   :  { %v2613_v0 = vld [vmem:[%s3951_s1 + $0x4] ss:$8 sps:$4 sm:$0xff]   ;;  %v2615_v1 = vld [vmem:[%s3951_s1] ss:$8 sps:$4 sm:$0xff]   ;;  %v2616_v2 = vld [vmem:[%s3951_s1 + $0x14] ss:$8 sps:$4 sm:$0xff]   ;;  %825 = vmatprep.mubr.bf16.mxu1 %v3032_v42 }
   0x2   :  { %670 = vmatprep.subr.bf16.mxu0 %v2613_v0  ;;  %v2618_v3 = vld [vmem:[%s3951_s1 + $0x10] ss:$8 sps:$4 sm:$0xff]   ;;  %v2619_v4 = vld [vmem:[%s3951_s1 + $0x24] ss:$8 sps:$4 sm:$0xff]   ;;  %v2621_v5 = vld [vmem:[%s3951_s1 + $0x20] ss:$8 sps:$4 sm:$0xff]  }
   0x3   :  { %671 = vmatpush1.bf16.msra.mxu0 %v2615_v1  ;;  %v2622_v6 = vld [vmem:[%s3951_s1 + $0x34] ss:$8 sps:$4 sm:$0xff]   ;;  %v2624_v7 = vld [vmem:[%s3951_s1 + $0x30] ss:$8 sps:$4 sm:$0xff]   ;;  %v2625_v8 = vld [vmem:[%s3951_s1 + $0x44] ss:$8 sps:$4 sm:$0xff]  }
   0x4   :  { %672 = vmatprep.subr.bf16.mxu0 %v2616_v2  ;;  %v2627_v9 = vld [vmem:[%s3951_s1 + $0x40] ss:$8 sps:$4 sm:$0xff]   ;;  %v2628_v10 = vld [vmem:[%s3951_s1 + $0x54] ss:$8 sps:$4 sm:$0xff]   ;;  %v2630_v11 = vld [vmem:[%s3951_s1 + $0x50] ss:$8 sps:$4 sm:$0xff]  }
   0x5   :  { %v2631_v12 = vld [vmem:[%s3951_s1 + $0x64] ss:$8 sps:$4 sm:$0xff]   ;;  %v2633_v15 = vld [vmem:[%s3951_s1 + $0x60] ss:$8 sps:$4 sm:$0xff]   ;;  %v2634_v16 = vld [vmem:[%s3951_s1 + $0x74] ss:$8 sps:$4 sm:$0xff]  }
   0x6   :  { %v53_v13 = vld [vmem:[%s3950_s0 + $0x8] sm:$0xff]  ;;  %v2636_v17 = vld [vmem:[%s3951_s1 + $0x70] ss:$8 sps:$4 sm:$0xff]   ;;  %v2640_v20 = vld [vmem:[%s3951_s1 + $0x94] ss:$8 sps:$4 sm:$0xff]  }
   0x7   :  { %673 = vmatpush1.bf16.msra.mxu0 %v2618_v3  ;;  %v60_v14 = vpack.c.bf16 %v53_v13, %v53_v13  ;;  %v2637_v18 = vld [vmem:[%s3951_s1 + $0x84] ss:$8 sps:$4 sm:$0xff]   ;;  %v2639_v19 = vld [vmem:[%s3951_s1 + $0x80] ss:$8 sps:$4 sm:$0xff]   ;;  %v2642_v21 = vld [vmem:[%s3951_s1 + $0x90] ss:$8 sps:$4 sm:$0xff]  }
   0x8   :  { %674 = vmatprep.subr.bf16.mxu0 %v2619_v4  ;;  %v2643_v22 = vld [vmem:[%s3951_s1 + $0xa4] ss:$8 sps:$4 sm:$0xff]   ;;  %v2645_v23 = vld [vmem:[%s3951_s1 + $0xa0] ss:$8 sps:$4 sm:$0xff]   ;;  %v2646_v24 = vld [vmem:[%s3951_s1 + $0xb4] ss:$8 sps:$4 sm:$0xff]  }
   0x9   :  { %702 = vmatprep.mubr.bf16.mxu0 %v60_v14  ;;  %v2648_v25 = vld [vmem:[%s3951_s1 + $0xb0] ss:$8 sps:$4 sm:$0xff]   ;;  %v2649_v26 = vld [vmem:[%s3951_s1 + $0xc4] ss:$8 sps:$4 sm:$0xff]   ;;  %v2651_v27 = vld [vmem:[%s3951_s1 + $0xc0] ss:$8 sps:$4 sm:$0xff]  }
   0xa   :  { %v2652_v28 = vld [vmem:[%s3951_s1 + $0xd4] ss:$8 sps:$4 sm:$0xff]   ;;  %v2654_v29 = vld [vmem:[%s3951_s1 + $0xd0] ss:$8 sps:$4 sm:$0xff]   ;;  %v2655_v30 = vld [vmem:[%s3951_s1 + $0xe4] ss:$8 sps:$4 sm:$0xff]  }
   0xb   :  { %675 = vmatpush1.bf16.msra.mxu0 %v2621_v5  ;;  %v2657_v31 = vld [vmem:[%s3951_s1 + $0xe0] ss:$8 sps:$4 sm:$0xff]   ;;  %v2658_v32 = vld [vmem:[%s3951_s1 + $0xf4] ss:$8 sps:$4 sm:$0xff]   ;;  %v2660_v33 = vld [vmem:[%s3951_s1 + $0xf0] ss:$8 sps:$4 sm:$0xff]  }
   0xc   :  { %676 = vmatprep.subr.bf16.mxu0 %v2622_v6  ;;  %v2663_v34 = vld [vmem:[%s3951_s1 + $0x104] ss:$8 sps:$4 sm:$0xff]   ;;  %v55_v36 = vld [vmem:[%s3950_s0 + $0x18] sm:$0xff]  ;;  %v2661_v38 = vld [vmem:[%s3951_s1 + $0x100] ss:$8 sps:$4 sm:$0xff]  }
   0xd   :  { %v52_v35 = vld [vmem:[%s3950_s0] sm:$0xff]  ;;  %v2666_v39 = vld [vmem:[%s3951_s1 + $0x114] ss:$8 sps:$4 sm:$0xff]   ;;  %v62_v40 = vpack.c.bf16 %v55_v36, %v55_v36  ;;  %v2664_v43 = vld [vmem:[%s3951_s1 + $0x110] ss:$8 sps:$4 sm:$0xff]  }
   0xe   :  { %v59_v37 = vpack.c.bf16 %v52_v35, %v52_v35  ;;  %v2754_v41 = vld [vmem:[%s3951_s1 + $0x304] ss:$8 sps:$4 sm:$0xff]   ;;  %v2759_v44 = vld [vmem:[%s3951_s1 + $0x300] ss:$8 sps:$4 sm:$0xff]   ;;  %v58_v46 = vld [vmem:[%s3950_s0 + $0x30] sm:$0xff] }
   0xf   :  { %677 = vmatpush1.bf16.msra.mxu0 %v2624_v7  ;;  %793 = vmatprep.subr.bf16.mxu1 %v2754_v41  ;;  %v2669_v45 = vld [vmem:[%s3951_s1 + $0x124] ss:$8 sps:$4 sm:$0xff]   ;;  %v65_v47 = vpack.c.bf16 %v58_v46, %v58_v46  ;;  %v2667_v49 = vld [vmem:[%s3951_s1 + $0x120] ss:$8 sps:$4 sm:$0xff]   ;;  %v2672_v52 = vld [vmem:[%s3951_s1 + $0x134] ss:$8 sps:$4 sm:$0xff]  }
  0x10   :  { %678 = vmatprep.subr.bf16.mxu0 %v2625_v8  ;;  %794 = vmatpush1.bf16.msra.mxu1 %v2759_v44  ;;  %v2760_v48 = vld [vmem:[%s3953_s3 + $0x40] sm:$0xff]   ;;  %v2762_v51 = vld [vmem:[%s3953_s3 + $0x48] sm:$0xff]   ;;  %v2764_v54 = vld [vmem:[%s3953_s3 + $0x50] sm:$0xff]  }
  0x11   :  { %v2761_v50 = vld [vmem:[%s3953_s3] sm:$0xff]   ;;  %2523 = vmatprep.subr.bf16.mxu1 %v2760_v48  ;;  %v2763_v53 = vld [vmem:[%s3953_s3 + $0x8] sm:$0xff]   ;;  %v2670_v55 = vld [vmem:[%s3951_s1 + $0x130] ss:$8 sps:$4 sm:$0xff]  }
  0x12   :  { %v2675_v56 = vld [vmem:[%s3951_s1 + $0x144] ss:$8 sps:$4 sm:$0xff]   ;;  %v2765_v57 = vld [vmem:[%s3953_s3 + $0x10] sm:$0xff]   ;;  %v2673_v58 = vld [vmem:[%s3951_s1 + $0x140] ss:$8 sps:$4 sm:$0xff]  }
  0x13   :  { %679 = vmatpush1.bf16.msra.mxu0 %v2627_v9  ;;  %2367 = vmatmul.mubr.msk.bf16.vlgmr.msra.gmra.mrb[0].mxu1 %vm666_vm0, %v65_v47  ;;  %v2766_v59 = vld [vmem:[%s3953_s3 + $0x58] sm:$0xff]   ;;  %v2768_v62 = vld [vmem:[%s3953_s3 + $0x60] sm:$0xff]  }
  0x14   :  { %680 = vmatprep.subr.bf16.mxu0 %v2628_v10  ;;  %2524 = vmatpush3.bf16.msra.mxu1 %v2761_v50  ;;  %v2678_v60 = vld [vmem:[%s3951_s1 + $0x154] ss:$8 sps:$4 sm:$0xff]   ;;  %v2676_v63 = vld [vmem:[%s3951_s1 + $0x150] ss:$8 sps:$4 sm:$0xff]   ;;  %v2681_v0 = vld [vmem:[%s3951_s1 + $0x164] ss:$8 sps:$4 sm:$0xff]  }
  0x15   :  { %2525 = vmatprep.subr.bf16.mxu1 %v2762_v51  ;;  %v2767_v61 = vld [vmem:[%s3953_s3 + $0x18] sm:$0xff]   ;;  %v2769_v1 = vld [vmem:[%s3953_s3 + $0x20] sm:$0xff]  }
  0x16   :  { %v2679_v2 = vld [vmem:[%s3951_s1 + $0x160] ss:$8 sps:$4 sm:$0xff]   ;;  %v2684_v3 = vld [vmem:[%s3951_s1 + $0x174] ss:$8 sps:$4 sm:$0xff]   ;;  %v2682_v4 = vld [vmem:[%s3951_s1 + $0x170] ss:$8 sps:$4 sm:$0xff]  }
  0x17   :  { %681 = vmatpush1.bf16.msra.mxu0 %v2630_v11  ;;  %v2687_v5 = vld [vmem:[%s3951_s1 + $0x184] ss:$8 sps:$4 sm:$0xff]   ;;  %v2685_v6 = vld [vmem:[%s3951_s1 + $0x180] ss:$8 sps:$4 sm:$0xff]   ;;  %v2690_v7 = vld [vmem:[%s3951_s1 + $0x194] ss:$8 sps:$4 sm:$0xff]  }
  0x18   :  { %682 = vmatprep.subr.bf16.mxu0 %v2631_v12  ;;  %2526 = vmatpush3.bf16.msra.mxu1 %v2763_v53  ;;  %v2688_v8 = vld [vmem:[%s3951_s1 + $0x190] ss:$8 sps:$4 sm:$0xff]   ;;  %v2693_v9 = vld [vmem:[%s3951_s1 + $0x1a4] ss:$8 sps:$4 sm:$0xff]   ;;  %v2691_v10 = vld [vmem:[%s3951_s1 + $0x1a0] ss:$8 sps:$4 sm:$0xff]  }
  0x19   :  { %2527 = vmatprep.subr.bf16.mxu1 %v2764_v54  ;;  %v2696_v11 = vld [vmem:[%s3951_s1 + $0x1b4] ss:$8 sps:$4 sm:$0xff]   ;;  %v2694_v12 = vld [vmem:[%s3951_s1 + $0x1b0] ss:$8 sps:$4 sm:$0xff]   ;;  %v2699_v13 = vld [vmem:[%s3951_s1 + $0x1c4] ss:$8 sps:$4 sm:$0xff]  }
  0x1a   :  { %v2697_v14 = vld [vmem:[%s3951_s1 + $0x1c0] ss:$8 sps:$4 sm:$0xff]  }
  0x1b   :  { %683 = vmatpush1.bf16.msra.mxu0 %v2633_v15  ;;  %v2702_v15 = vld [vmem:[%s3951_s1 + $0x1d4] ss:$8 sps:$4 sm:$0xff]  }
  0x1c   :  { %684 = vmatprep.subr.bf16.mxu0 %v2634_v16  ;;  %2528 = vmatpush3.bf16.msra.mxu1 %v2765_v57  ;;  %v2700_v16 = vld [vmem:[%s3951_s1 + $0x1d0] ss:$8 sps:$4 sm:$0xff]  }
  0x1d   :  { %2529 = vmatprep.subr.bf16.mxu1 %v2766_v59 }
  0x1f   :  { %685 = vmatpush1.bf16.msra.mxu0 %v2636_v17  ;;  %v2705_v17 = vld [vmem:[%s3951_s1 + $0x1e4] ss:$8 sps:$4 sm:$0xff]  }
  0x20   :  { %686 = vmatprep.subr.bf16.mxu0 %v2637_v18  ;;  %2530 = vmatpush3.bf16.msra.mxu1 %v2767_v61  ;;  %v2703_v18 = vld [vmem:[%s3951_s1 + $0x1e0] ss:$8 sps:$4 sm:$0xff]  }
  0x21   :  { %2531 = vmatprep.subr.bf16.mxu1 %v2768_v62 }
  0x23   :  { %687 = vmatpush1.bf16.msra.mxu0 %v2639_v19  ;;  %v2708_v19 = vld [vmem:[%s3951_s1 + $0x1f4] ss:$8 sps:$4 sm:$0xff]  }
  0x24   :  { %688 = vmatprep.subr.bf16.mxu0 %v2640_v20  ;;  %2532 = vmatpush3.bf16.msra.mxu1 %v2769_v1  ;;  %v2706_v20 = vld [vmem:[%s3951_s1 + $0x1f0] ss:$8 sps:$4 sm:$0xff]  }
  0x27   :  { %689 = vmatpush1.bf16.msra.mxu0 %v2642_v21  ;;  %v54_v21 = vld [vmem:[%s3950_s0 + $0x10] sm:$0xff] }
  0x28   :  { %690 = vmatprep.subr.bf16.mxu0 %v2643_v22  ;;  %v2711_v22 = vld [vmem:[%s3951_s1 + $0x204] ss:$8 sps:$4 sm:$0xff]  }
  0x2b   :  { %691 = vmatpush1.bf16.msra.mxu0 %v2645_v23  ;;  %v57_v23 = vld [vmem:[%s3950_s0 + $0x28] sm:$0xff] }
  0x2c   :  { %692 = vmatprep.subr.bf16.mxu0 %v2646_v24  ;;  %v2709_v24 = vld [vmem:[%s3951_s1 + $0x200] ss:$8 sps:$4 sm:$0xff]  }
  0x2f   :  { %693 = vmatpush1.bf16.msra.mxu0 %v2648_v25  ;;  %v61_v25 = vpack.c.bf16 %v54_v21, %v54_v21 }
  0x30   :  { %694 = vmatprep.subr.bf16.mxu0 %v2649_v26  ;;  %v2714_v26 = vld [vmem:[%s3951_s1 + $0x214] ss:$8 sps:$4 sm:$0xff]  }
  0x33   :  { %695 = vmatpush1.bf16.msra.mxu0 %v2651_v27  ;;  %v64_v27 = vpack.c.bf16 %v57_v23, %v57_v23 }
  0x34   :  { %696 = vmatprep.subr.bf16.mxu0 %v2652_v28 }
  0x37   :  { %697 = vmatpush1.bf16.msra.mxu0 %v2654_v29 }
  0x38   :  { %698 = vmatprep.subr.bf16.mxu0 %v2655_v30 }
  0x3b   :  { %699 = vmatpush1.bf16.msra.mxu0 %v2657_v31 }
  0x3c   :  { %700 = vmatprep.subr.bf16.mxu0 %v2658_v32 }
  0x3f   :  { %701 = vmatpush1.bf16.msra.mxu0 %v2660_v33 }
  0x40   :  { %711 = vmatprep.subr.bf16.mxu0 %v2663_v34 }
  0x42   :  { %703 = vmatmul.mubr.bf16.vlgmr.msra.gmra.mrb[0].mxu0 %v59_v37 }
  0x43   :  { %712 = vmatpush1.bf16.msra.mxu0 %v2661_v38  ;;  %743 = vmatprep.mubr.bf16.mxu0 %v62_v40 }
  0x44   :  { %713 = vmatprep.subr.bf16.mxu0 %v2666_v39 }
  0x47   :  { %714 = vmatpush1.bf16.msra.mxu0 %v2664_v43 }
  0x48   :  { %715 = vmatprep.subr.bf16.mxu0 %v2669_v45 }
  0x4b   :  { %716 = vmatpush1.bf16.msra.mxu0 %v2667_v49 }
  0x4c   :  { %717 = vmatprep.subr.bf16.mxu0 %v2672_v52 }
  0x4f   :  { %718 = vmatpush1.bf16.msra.mxu0 %v2670_v55 }
  0x50   :  { %719 = vmatprep.subr.bf16.mxu0 %v2675_v56 }
  0x53   :  { %720 = vmatpush1.bf16.msra.mxu0 %v2673_v58 }
  0x54   :  { %721 = vmatprep.subr.bf16.mxu0 %v2678_v60 }
  0x57   :  { %722 = vmatpush1.bf16.msra.mxu0 %v2676_v63 }
  0x58   :  { %723 = vmatprep.subr.bf16.mxu0 %v2681_v0 }
  0x5b   :  { %724 = vmatpush1.bf16.msra.mxu0 %v2679_v2 }
  0x5c   :  { %725 = vmatprep.subr.bf16.mxu0 %v2684_v3 }
  0x5f   :  { %726 = vmatpush1.bf16.msra.mxu0 %v2682_v4 }
  0x60   :  { %727 = vmatprep.subr.bf16.mxu0 %v2687_v5 }
  0x63   :  { %728 = vmatpush1.bf16.msra.mxu0 %v2685_v6 }
  0x64   :  { %729 = vmatprep.subr.bf16.mxu0 %v2690_v7 }
  0x67   :  { %730 = vmatpush1.bf16.msra.mxu0 %v2688_v8 }
  0x68   :  { %731 = vmatprep.subr.bf16.mxu0 %v2693_v9 }
  0x6b   :  { %732 = vmatpush1.bf16.msra.mxu0 %v2691_v10 }
  0x6c   :  { %733 = vmatprep.subr.bf16.mxu0 %v2696_v11 }
  0x6f   :  { %734 = vmatpush1.bf16.msra.mxu0 %v2694_v12 }
  0x70   :  { %735 = vmatprep.subr.bf16.mxu0 %v2699_v13 }
  0x73   :  { %736 = vmatpush1.bf16.msra.mxu0 %v2697_v14 }
  0x74   :  { %737 = vmatprep.subr.bf16.mxu0 %v2702_v15 }
  0x77   :  { %738 = vmatpush1.bf16.msra.mxu0 %v2700_v16 }
  0x78   :  { %739 = vmatprep.subr.bf16.mxu0 %v2705_v17 }
  0x7b   :  { %740 = vmatpush1.bf16.msra.mxu0 %v2703_v18 }
  0x7c   :  { %741 = vmatprep.subr.bf16.mxu0 %v2708_v19 }
  0x7f   :  { %742 = vmatpush1.bf16.msra.mxu0 %v2706_v20 }
  0x80   :  { %752 = vmatprep.subr.bf16.mxu0 %v2711_v22 }
  0x82   :  { %744 = vmatmul.mubr.bf16.vlgmr.msra.gmra.mrb[0].mxu0 %v61_v25 }
  0x83   :  { %22 = vsyncpa [#allocation5], 0  ;;  %753 = vmatpush1.bf16.msra.mxu0 %v2709_v24  ;;  %v2712_v28 = vld [vmem:[%s3951_s1 + $0x210] ss:$8 sps:$4 sm:$0xff]   ;;  %784 = vmatprep.mubr.bf16.mxu0 %v64_v27  ;;  %v2717_v29 = vld [vmem:[%s3951_s1 + $0x224] ss:$8 sps:$4 sm:$0xff]   ;;  %v166_v7 = vlaneseq }
  0x84   :  { %754 = vmatprep.subr.bf16.mxu0 %v2714_v26  ;;  %v2715_v30 = vld [vmem:[%s3951_s1 + $0x220] ss:$8 sps:$4 sm:$0xff]   ;;  %v2720_v31 = vld [vmem:[%s3951_s1 + $0x234] ss:$8 sps:$4 sm:$0xff]   ;;  %v2718_v32 = vld [vmem:[%s3951_s1 + $0x230] ss:$8 sps:$4 sm:$0xff]  }
  0x85   :  { %v2723_v33 = vld [vmem:[%s3951_s1 + $0x244] ss:$8 sps:$4 sm:$0xff]   ;;  %v2721_v34 = vld [vmem:[%s3951_s1 + $0x240] ss:$8 sps:$4 sm:$0xff]   ;;  %v2726_v35 = vld [vmem:[%s3951_s1 + $0x254] ss:$8 sps:$4 sm:$0xff]  }
  0x86   :  { %v2724_v36 = vld [vmem:[%s3951_s1 + $0x250] ss:$8 sps:$4 sm:$0xff]   ;;  %v2729_v37 = vld [vmem:[%s3951_s1 + $0x264] ss:$8 sps:$4 sm:$0xff]   ;;  %v2727_v38 = vld [vmem:[%s3951_s1 + $0x260] ss:$8 sps:$4 sm:$0xff]  }
  0x87   :  { %755 = vmatpush1.bf16.msra.mxu0 %v2712_v28  ;;  %v2732_v39 = vld [vmem:[%s3951_s1 + $0x274] ss:$8 sps:$4 sm:$0xff]   ;;  %v2770_v40 = vld [vmem:[%s3953_s3 + $0x68] sm:$0xff]   ;;  %v2730_v41 = vld [vmem:[%s3951_s1 + $0x270] ss:$8 sps:$4 sm:$0xff]   ;;  %v3033_v6 = vmov 0.0  }
  0x88   :  { %756 = vmatprep.subr.bf16.mxu0 %v2717_v29  ;;  %v2735_v43 = vld [vmem:[%s3951_s1 + $0x284] ss:$8 sps:$4 sm:$0xff]   ;;  %2533 = vmatprep.subr.bf16.mxu1 %v2770_v40  ;;  %v2733_v44 = vld [vmem:[%s3951_s1 + $0x280] ss:$8 sps:$4 sm:$0xff]   ;;  %v2738_v45 = vld [vmem:[%s3951_s1 + $0x294] ss:$8 sps:$4 sm:$0xff]  }
  0x89   :  { %v2736_v46 = vld [vmem:[%s3951_s1 + $0x290] ss:$8 sps:$4 sm:$0xff]   ;;  %v2741_v47 = vld [vmem:[%s3951_s1 + $0x2a4] ss:$8 sps:$4 sm:$0xff]   ;;  %v2739_v48 = vld [vmem:[%s3951_s1 + $0x2a0] ss:$8 sps:$4 sm:$0xff]  }
  0x8a   :  { %v2744_v49 = vld [vmem:[%s3951_s1 + $0x2b4] ss:$8 sps:$4 sm:$0xff]   ;;  %v2742_v50 = vld [vmem:[%s3951_s1 + $0x2b0] ss:$8 sps:$4 sm:$0xff]   ;;  %v2747_v51 = vld [vmem:[%s3951_s1 + $0x2c4] ss:$8 sps:$4 sm:$0xff]  }
  0x8b   :  { %757 = vmatpush1.bf16.msra.mxu0 %v2715_v30  ;;  %v2745_v52 = vld [vmem:[%s3951_s1 + $0x2c0] ss:$8 sps:$4 sm:$0xff]   ;;  %v2750_v53 = vld [vmem:[%s3951_s1 + $0x2d4] ss:$8 sps:$4 sm:$0xff]   ;;  %v2748_v54 = vld [vmem:[%s3951_s1 + $0x2d0] ss:$8 sps:$4 sm:$0xff]  }
  0x8c   :  { %758 = vmatprep.subr.bf16.mxu0 %v2720_v31  ;;  %v2753_v55 = vld [vmem:[%s3951_s1 + $0x2e4] ss:$8 sps:$4 sm:$0xff]   ;;  %v2751_v56 = vld [vmem:[%s3951_s1 + $0x2e0] ss:$8 sps:$4 sm:$0xff]   ;;  %v2758_v57 = vld [vmem:[%s3951_s1 + $0x2f4] ss:$8 sps:$4 sm:$0xff]  }
  0x8d   :  { %v2756_v58 = vld [vmem:[%s3951_s1 + $0x2f0] ss:$8 sps:$4 sm:$0xff]   ;;  %v56_v59 = vld [vmem:[%s3950_s0 + $0x20] sm:$0xff]  ;;  %v2771_v61 = vld [vmem:[%s3953_s3 + $0x28] sm:$0xff]   ;;  %v3483_v8 = vshrl.u32 %v166_v7, 7  ;;  %vm3034_vm1 = vmmov 0  }
  0x8e   :  { %v63_v60 = vpack.c.bf16 %v56_v59, %v56_v59  ;;  %2534 = vmatpush3.bf16.msra.mxu1 %v2771_v61  ;;  %v2772_v62 = vld [vmem:[%s3953_s3 + $0x70] sm:$0xff]   ;;  %v2774_v1 = vld [vmem:[%s3953_s3 + $0x78] sm:$0xff]   ;;  %v164_v10 = vld [vmem:[%s3952_s2] sm:$0x3]  ;;  %vm1054_vm2 = vcmask 523264   ;;  %vm2239_vm3 = vcmask 326656  }
  0x8f   :  { %759 = vmatpush1.bf16.msra.mxu0 %v2718_v32  ;;  %v2773_v63 = vld [vmem:[%s3953_s3 + $0x30] sm:$0xff]   ;;  %2535 = vmatprep.subr.bf16.mxu1 %v2772_v62  ;;  %v2775_v3 = vld [vmem:[%s3953_s3 + $0x38] sm:$0xff]   ;;  %v3486_v9 = vsub.s32 0, %v3483_v8  ;;  %v3492_v11 = vsub.s32 1, %v3483_v8  ;;  %v2776_v25 = vld [vmem:[%s3955_s5] sm:$0xff]   ;;  %vm1132_vm4 = vcmask 1041408  }
  0x90   :  { %760 = vmatprep.subr.bf16.mxu0 %v2723_v33  ;;  %v2777_v27 = vld [vmem:[%s3955_s5 + $0x8] sm:$0xff]   ;;  %v2778_v28 = vld [vmem:[%s3955_s5 + $0x10] sm:$0xff]   ;;  %v2779_v29 = vld [vmem:[%s3955_s5 + $0x18] sm:$0xff]   ;;  %vm1128_vm5 = vcmask 162816  }
  0x91   :  { %v169_v12 = vrot.slane %v164_v10, %v3486_v9  ;;  %v173_v13 = vrot.slane %v164_v10, %v3492_v11  ;;  %v2368_v31 = vld [vmem:[%s3954_s4] ss:$0 sm:$0xff]  ;;  %v2787_v59 = vld [vmem:[%s3960_s10 + $0x14] ss:$8 sps:$4 sm:$0xff]   ;;  %v2790_v61 = vld [vmem:[%s3960_s10 + $0x24] ss:$8 sps:$4 sm:$0xff]  }
  0x92   :  { %2536 = vmatpush3.bf16.msra.mxu1 %v2773_v63  ;;  %v2385_v40 = vld [vmem:[%s3956_s6] ss:$0 sm:$0xff]  ;;  %s3035_s6 = smov 108   ;;  %v2793_v63 = vld [vmem:[%s3960_s10 + $0x34] ss:$8 sps:$4 sm:$0xff]  }
  0x93   :  { %761 = vmatpush1.bf16.msra.mxu0 %v2721_v34  ;;  %2537 = vmatprep.subr.bf16.mxu1 %v2774_v1  ;;  %v2788_v62 = vld [vmem:[%s3960_s10 + $0x20] ss:$8 sps:$4 sm:$0xff]   ;;  %v2797_v1 = vld [vmem:[%s3962_s12 + $0x10] ss:$28 sps:$4 sm:$0xff]   ;;  %v2815_v7 = vld [vmem:[%s3962_s12 + $0xb8] ss:$28 sps:$4 sm:$0xff]  }
  0x94   :  { %762 = vmatprep.subr.bf16.mxu0 %v2726_v35  ;;  %v2817_v10 = vld [vmem:[%s3962_s12 + $0xbc] ss:$28 sps:$4 sm:$0xff]  }
  0x96   :  { %2538 = vmatpush3.bf16.msra.mxu1 %v2775_v3  ;;  %v2803_v3 = vld [vmem:[%s3962_s12 + $0x48] ss:$28 sps:$4 sm:$0xff]  }
  0x97   :  { %763 = vmatpush1.bf16.msra.mxu0 %v2724_v36  ;;  %2575 = vmatprep.subr.bf16.mxu1 %v3033_v6 }
  0x98   :  { %764 = vmatprep.subr.bf16.mxu0 %v2729_v37 }
  0x9b   :  { %765 = vmatpush1.bf16.msra.mxu0 %v2727_v38 }
  0x9c   :  { %766 = vmatprep.subr.bf16.mxu0 %v2732_v39  ;;  %v2780_v39 = vld [vmem:[%s3958_s8] sm:$0xff]  }
  0x9f   :  { %767 = vmatpush1.bf16.msra.mxu0 %v2730_v41 }
  0xa0   :  { %768 = vmatprep.subr.bf16.mxu0 %v2735_v43 }
  0xa3   :  { %769 = vmatpush1.bf16.msra.mxu0 %v2733_v44 }
  0xa4   :  { %770 = vmatprep.subr.bf16.mxu0 %v2738_v45 }
  0xa7   :  { %771 = vmatpush1.bf16.msra.mxu0 %v2736_v46 }
  0xa8   :  { %772 = vmatprep.subr.bf16.mxu0 %v2741_v47 }
  0xab   :  { %773 = vmatpush1.bf16.msra.mxu0 %v2739_v48 }
  0xac   :  { %774 = vmatprep.subr.bf16.mxu0 %v2744_v49  ;;  %v2781_v49 = vld [vmem:[%s3958_s8 + $0x8] ss:$0 sps:$4 sm:$0x33]  }
  0xaf   :  { %775 = vmatpush1.bf16.msra.mxu0 %v2742_v50  ;;  %v1134_v50 = vsel %vm1132_vm4, %v2781_v49, 0  ;;  %v2818_v49 = vld [vmem:[%s3962_s12 + $0xe0] ss:$28 sps:$4 sm:$0xff]  }
  0xb0   :  { %776 = vmatprep.subr.bf16.mxu0 %v2747_v51  ;;  %v2784_v51 = vld [vmem:[%s3960_s10 + $0x4] ss:$8 sps:$4 sm:$0xff]  }
  0xb3   :  { %777 = vmatpush1.bf16.msra.mxu0 %v2745_v52 }
  0xb4   :  { %778 = vmatprep.subr.bf16.mxu0 %v2750_v53  ;;  %v1098_v53 = vld [vmem:[%s3957_s7] sm:$0xff] }
  0xb7   :  { %779 = vmatpush1.bf16.msra.mxu0 %v2748_v54 }
  0xb8   :  { %780 = vmatprep.subr.bf16.mxu0 %v2753_v55 }
  0xbb   :  { %781 = vmatpush1.bf16.msra.mxu0 %v2751_v56 }
  0xbc   :  { %782 = vmatprep.subr.bf16.mxu0 %v2758_v57  ;;  %v2782_v57 = vld [vmem:[%s3960_s10] ss:$8 sps:$4 sm:$0xff]  }
  0xbf   :  { %783 = vmatpush1.bf16.msra.mxu0 %v2756_v58 }
  0xc2   :  { %785 = vmatmul.mubr.bf16.vlgmr.msra.gmra.mrb[0].mxu0 %v63_v60  ;;  %v2785_v60 = vld [vmem:[%s3960_s10 + $0x10] ss:$8 sps:$4 sm:$0xff]  }
  0xe6   :  { %v827_v0 = vpop.f32.mrb[0].mxu1 }
  0xe7   :  { %v829_v2 = vpop.f32.mrb[1].mxu1 }
  0xe8   :  { %v831_v4 = vpop.f32.mrb[2].mxu1 }
  0xe9   :  { %v832_v5 = vpop.f32.mrb[3].mxu1  ;;  %v2805_v4 = vld [vmem:[%s3962_s12 + $0x4c] ss:$28 sps:$4 sm:$0xff]  }
  0xea   :  { %v2809_v5 = vld [vmem:[%s3962_s12 + $0x80] ss:$28 sps:$4 sm:$0xff]  }
 0x195   :  { %v786_v14 = vpop.f32.mrb[0].mxu0 }
 0x196   :  { %v2595_v15 = vadd.f32 %v786_v14, %v169_v12  ;;  %v788_v16 = vpop.f32.mrb[1].mxu0  ;;  %v2821_v12 = vld [vmem:[%s3962_s12 + $0xf0] ss:$28 sps:$4 sm:$0xff]   ;;  %v2827_v14 = vld [vmem:[%s3962_s12 + $0x128] ss:$28 sps:$4 sm:$0xff]  }
 0x197   :  { %v2597_v17 = vadd.f32 %v788_v16, %v173_v13  ;;  %v790_v18 = vpop.f32.mrb[2].mxu0  ;;  %v2823_v13 = vld [vmem:[%s3962_s12 + $0xf4] ss:$28 sps:$4 sm:$0xff]   ;;  %v2833_v16 = vld [vmem:[%s3962_s12 + $0x160] ss:$28 sps:$4 sm:$0xff]  }
 0x198   :  { %v2596_v19 = vadd.f32 %v2595_v15, %v827_v0  ;;  %v791_v20 = vpop.f32.mrb[3].mxu0  ;;  %v2796_v0 = vld [vmem:[%s3962_s12 + $0x4] ss:$28 sps:$4 sm:$0xff]   ;;  %v2829_v15 = vld [vmem:[%s3962_s12 + $0x12c] ss:$28 sps:$4 sm:$0xff]  }
 0x199   :  { %v2598_v21 = vadd.f32 %v2597_v17, %v829_v2  ;;  %v2799_v2 = vld [vmem:[%s3962_s12 + $0x14] ss:$28 sps:$4 sm:$0xff]   ;;  %v2835_v17 = vld [vmem:[%s3962_s12 + $0x164] ss:$28 sps:$4 sm:$0xff]  }
 0x19a   :  { %v834_v22 = vmax.f32 %v2596_v19, 0.0  ;;  %2109 = vmatprep.subr.bf16.mxu0 %v2799_v2  ;;  %v2839_v18 = vld [vmem:[%s3962_s12 + $0x198] ss:$28 sps:$4 sm:$0xff]   ;;  %v2845_v20 = vld [vmem:[%s3962_s12 + $0x1d0] ss:$28 sps:$4 sm:$0xff]  }
 0x19b   :  { %v835_v23 = vmax.f32 %v2598_v21, 0.0  ;;  %2110 = vmatpush1.bf16.msra.mxu0 %v2797_v1  ;;  %v2841_v19 = vld [vmem:[%s3962_s12 + $0x19c] ss:$28 sps:$4 sm:$0xff]   ;;  %v2847_v21 = vld [vmem:[%s3962_s12 + $0x1d4] ss:$28 sps:$4 sm:$0xff]  }
 0x19c   :  { %v836_v26 = vpack.c.bf16 %v834_v22, %v834_v22  ;;  %2111 = vmatprep.subr.bf16.mxu0 %v2805_v4  ;;  %v2851_v22 = vld [vmem:[%s3962_s12 + $0x208] ss:$28 sps:$4 sm:$0xff]   ;;  %v2874_v1 = vld [vmem:[%s3962_s12 + $0x2dc] ss:$28 sps:$4 sm:$0xff]   ;;  %v2878_v4 = vld [vmem:[%s3962_s12 + $0x310] ss:$28 sps:$4 sm:$0xff]  }
 0x19d   :  { %v837_v24 = vpack.c.bf16 %v835_v23, %v835_v23  ;;  %v2853_v23 = vld [vmem:[%s3962_s12 + $0x20c] ss:$28 sps:$4 sm:$0xff]   ;;  %v2872_v2 = vld [vmem:[%s3962_s12 + $0x2d8] ss:$28 sps:$4 sm:$0xff]  }
 0x19f   :  { %1005 = vmatprep.mubr.bf16.mxu1 %v837_v24  ;;  %2112 = vmatpush1.bf16.msra.mxu0 %v2803_v3  ;;  %v2857_v24 = vld [vmem:[%s3962_s12 + $0x240] ss:$28 sps:$4 sm:$0xff]   ;;  %v2880_v3 = vld [vmem:[%s3962_s12 + $0x314] ss:$28 sps:$4 sm:$0xff]  }
 0x1a0   :  { %1006 = vmatmul.mubr.bf16.vlgmr.msra.gmra.mrb[4].mxu1 %v836_v26  ;;  %v2863_v26 = vld [vmem:[%s3962_s12 + $0x278] ss:$28 sps:$4 sm:$0xff]  }
 0x1a1   :  { %2576 = vmatpush3.bf16.msra.mxu1 %v2776_v25  ;;  %2583 = vmatprep.mubr.msk.bf16.mxu1 %vm3034_vm1, %v3033_v6  ;;  %v2859_v25 = vld [vmem:[%s3962_s12 + $0x244] ss:$28 sps:$4 sm:$0xff]  }
 0x1a2   :  { %2577 = vmatprep.subr.bf16.mxu1 %v3033_v6 }
 0x1a5   :  { %2578 = vmatpush3.bf16.msra.mxu1 %v2777_v27  ;;  %v2865_v27 = vld [vmem:[%s3962_s12 + $0x27c] ss:$28 sps:$4 sm:$0xff]  }
 0x1a6   :  { %2579 = vmatprep.subr.bf16.mxu1 %v3033_v6 }
 0x1a9   :  { %2580 = vmatpush3.bf16.msra.mxu1 %v2778_v28  ;;  %v2869_v28 = vld [vmem:[%s3962_s12 + $0x2b0] ss:$28 sps:$4 sm:$0xff]  }
 0x1aa   :  { %2581 = vmatprep.subr.bf16.mxu1 %v3033_v6 }
 0x1ad   :  { %2582 = vmatpush3.bf16.msra.mxu1 %v2779_v29  ;;  %v2871_v29 = vld [vmem:[%s3962_s12 + $0x2b4] ss:$28 sps:$4 sm:$0xff]  }
 0x1ae   :  { %2587 = vmatprep.subr.bf16.mxu1 %v3033_v6 }
 0x273   :  { %v2539_v30 = vpop.f32.mrb[4].mxu1 }
 0x274   :  { %v2540_v32 = vpop.f32.mrb[5].mxu1 }
 0x275   :  { %v2541_v33 = vadd.f32 %v2540_v32, %v2539_v30  ;;  %v2542_v34 = vpop.f32.mrb[6].mxu1  ;;  %v2875_v30 = vld [vmem:[%s3962_s12 + $0x2e8] ss:$28 sps:$4 sm:$0xff]   ;;  %v2391_v32 = vld [vmem:[%s3959_s9] ss:$0 sm:$0xff] }
 0x276   :  { %v2543_v35 = vpop.f32.mrb[7].mxu1 }
 0x277   :  { %v1008_v36 = vadd.f32 %v2541_v33, %v2368_v31  ;;  %v2877_v31 = vld [vmem:[%s3962_s12 + $0x2ec] ss:$28 sps:$4 sm:$0xff]  }
 0x279   :  { %v1013_v37 = vmax.f32 %v1008_v36, 0.0 }
 0x27b   :  { %v1014_v38 = vpack.c.bf16 %v1013_v37, %v1013_v37 }
 0x27d   :  { %2584 = vmatmul.mubr.msk.bf16.vlgmr.msra.gmra.mrb[8].mxu1 %vm1054_vm2, %v1014_v38 }
 0x27e   :  { %2591 = vmatprep.mubr.msk.bf16.mxu1 %vm3034_vm1, %v3033_v6  ;;  %2588 = vmatpush3.bf16.msra.mxu1 %v2780_v39  ;;  %v2794_v39 = vld [vmem:[%s3962_s12] ss:$28 sps:$4 sm:$0xff]  }
 0x27f   :  { %2589 = vmatprep.subr.bf16.mxu1 %v3033_v6  ;;  %v2811_v6 = vld [vmem:[%s3962_s12 + $0x84] ss:$28 sps:$4 sm:$0xff]  }
 0x280   :  { %2113 = vmatprep.subr.bf16.mxu0 %v2811_v6  ;;  %v2881_v6 = vld [vmem:[%s3962_s12 + $0x320] ss:$28 sps:$4 sm:$0xff]  }
 0x281   :  { %2114 = vmatpush1.bf16.msra.mxu0 %v2809_v5  ;;  %v2883_v5 = vld [vmem:[%s3962_s12 + $0x324] ss:$28 sps:$4 sm:$0xff]  }
 0x282   :  { %2590 = vmatpush3.bf16.msra.mxu1 %v1134_v50  ;;  %2115 = vmatprep.subr.bf16.mxu0 %v2817_v10  ;;  %v2826_v50 = vld [vmem:[%s3962_s12 + $0x11c] ss:$28 sps:$4 sm:$0xff]   ;;  %v2884_v10 = vld [vmem:[%s3962_s12 + $0x348] ss:$28 sps:$4 sm:$0xff]  }
 0x283   :  { %1241 = vmatprep.subr.bf16.mxu1 %v2784_v51  ;;  %v2824_v51 = vld [vmem:[%s3962_s12 + $0x118] ss:$28 sps:$4 sm:$0xff]  }
 0x285   :  { %2116 = vmatpush1.bf16.msra.mxu0 %v2815_v7  ;;  %v2886_v7 = vld [vmem:[%s3962_s12 + $0x34c] ss:$28 sps:$4 sm:$0xff]  }
 0x286   :  { %2117 = vmatprep.subr.bf16.mxu0 %v2823_v13  ;;  %v2887_v13 = vld [vmem:[%s3962_s12 + $0x358] ss:$28 sps:$4 sm:$0xff]  }
 0x289   :  { %2118 = vmatpush1.bf16.msra.mxu0 %v2821_v12  ;;  %v2889_v12 = vld [vmem:[%s3962_s12 + $0x35c] ss:$28 sps:$4 sm:$0xff]  }
 0x28a   :  { %2119 = vmatprep.subr.bf16.mxu0 %v2829_v15  ;;  %v1186_v15 = vld [vmem:[%s3961_s11] sm:$0x3] }
 0x28d   :  { %2120 = vmatpush1.bf16.msra.mxu0 %v2827_v14  ;;  %v2892_v14 = vld [vmem:[%s3962_s12 + $0xc] ss:$28 sps:$4 sm:$0xff]  }
 0x28e   :  { %2121 = vmatprep.subr.bf16.mxu0 %v2835_v17  ;;  %v1195_v17 = vrot.slane %v1186_v15, %v3492_v11 }
 0x291   :  { %2122 = vmatpush1.bf16.msra.mxu0 %v2833_v16  ;;  %v1191_v16 = vrot.slane %v1186_v15, %v3486_v9  ;;  %v3910_v15 = vld [vmem:[%s3963_s13] sm:$0x7f] }
 0x292   :  { %2123 = vmatprep.subr.bf16.mxu0 %v2841_v19 }
 0x295   :  { %2124 = vmatpush1.bf16.msra.mxu0 %v2839_v18 }
 0x296   :  { %2125 = vmatprep.subr.bf16.mxu0 %v2847_v21 }
 0x299   :  { %2126 = vmatpush1.bf16.msra.mxu0 %v2845_v20 }
 0x29a   :  { %2127 = vmatprep.subr.bf16.mxu0 %v2853_v23 }
 0x29d   :  { %2128 = vmatpush1.bf16.msra.mxu0 %v2851_v22 }
 0x29e   :  { %2129 = vmatprep.subr.bf16.mxu0 %v2859_v25 }
 0x2a1   :  { %2130 = vmatpush1.bf16.msra.mxu0 %v2857_v24 }
 0x2a2   :  { %2131 = vmatprep.subr.bf16.mxu0 %v2865_v27  ;;  %v2890_v27 = vld [vmem:[%s3962_s12 + $0x8] ss:$28 sps:$4 sm:$0xff]  }
 0x2a5   :  { %2132 = vmatpush1.bf16.msra.mxu0 %v2863_v26 }
 0x2a6   :  { %2133 = vmatprep.subr.bf16.mxu0 %v2871_v29  ;;  %v2895_v29 = vld [vmem:[%s3962_s12 + $0x44] ss:$28 sps:$4 sm:$0xff]  }
 0x2a9   :  { %2134 = vmatpush1.bf16.msra.mxu0 %v2869_v28 }
 0x2aa   :  { %2135 = vmatprep.subr.bf16.mxu0 %v2877_v31  ;;  %v2898_v31 = vld [vmem:[%s3962_s12 + $0x7c] ss:$28 sps:$4 sm:$0xff]  }
 0x2ad   :  { %2136 = vmatpush1.bf16.msra.mxu0 %v2875_v30  ;;  %v2893_v30 = vld [vmem:[%s3962_s12 + $0x40] ss:$28 sps:$4 sm:$0xff]  }
 0x2ae   :  { %2137 = vmatprep.subr.bf16.mxu0 %v2883_v5  ;;  %v2948_v5 = vld [vmem:[%s3962_s12 + $0x2f0] ss:$28 sps:$4 sm:$0xff]  }
 0x2b1   :  { %2138 = vmatpush1.bf16.msra.mxu0 %v2881_v6  ;;  %v2949_v6 = vld [vmem:[%s3962_s12 + $0x130] ss:$28 sps:$4 sm:$0xff]  }
 0x2b2   :  { %2139 = vmatprep.subr.bf16.mxu0 %v2889_v12  ;;  %v2952_v12 = vld [vmem:[%s3962_s12 + $0x360] ss:$28 sps:$4 sm:$0xff]  }
 0x2b5   :  { %2140 = vmatpush1.bf16.msra.mxu0 %v2887_v13  ;;  %v2953_v13 = vld [vmem:[%s3962_s12 + $0x1a0] ss:$28 sps:$4 sm:$0xff]  }
 0x350   :  { %v1092_v41 = vpop.f32.mrb[8].mxu1 }
 0x351   :  { %v1093_v43 = vadd.f32 %v2385_v40, %v1092_v41  ;;  %v2585_v44 = vpop.f32.mrb[9].mxu1  ;;  %v2802_v41 = vld [vmem:[%s3962_s12 + $0x3c] ss:$28 sps:$4 sm:$0xff]  }
 0x352   :  { %v1095_v45 = vpop.f32.mrb[10].mxu1  ;;  %v2808_v44 = vld [vmem:[%s3962_s12 + $0x74] ss:$28 sps:$4 sm:$0xff]  }
 0x353   :  { %v1099_v46 = vmul.f32 0.5, %v1093_v43  ;;  %v2586_v47 = vpop.f32.mrb[11].mxu1  ;;  %2240 = vst.msk [vmem:[#allocation4] sm:$0xff] %vm2239_vm3, %v1093_v43  ;;  %v2806_v45 = vld [vmem:[%s3962_s12 + $0x70] ss:$28 sps:$4 sm:$0xff]  }
 0x354   :  { %v2812_v47 = vld [vmem:[%s3962_s12 + $0xa8] ss:$28 sps:$4 sm:$0xff]  }
 0x355   :  { %v1100_v48 = vmul.f32 1.442695, %v1099_v46  ;;  %v2814_v46 = vld [vmem:[%s3962_s12 + $0xac] ss:$28 sps:$4 sm:$0xff]  }
 0x357   :  { %2954 = vpow2.f32 %v1100_v48  ;;  %v2820_v48 = vld [vmem:[%s3962_s12 + $0xe4] ss:$28 sps:$4 sm:$0xff]  }
 0x361   :  { %v2955_v52 = vpop.eup %2954 }
 0x362   :  { %1103 = vrot.lane.b32.xlu0 %v2955_v52, %s3035_s6  ;;  %v2832_v52 = vld [vmem:[%s3962_s12 + $0x154] ss:$28 sps:$4 sm:$0xff]  }
 0x3d4   :  { %v1104_v54 = vpop.permute.xlu0 %1103 }
 0x3d5   :  { %v1106_v55 = vmul.f32 %v1104_v54, %v1098_v53  ;;  %v2830_v53 = vld [vmem:[%s3962_s12 + $0x150] ss:$28 sps:$4 sm:$0xff]  }
 0x3d6   :  { %v2838_v54 = vld [vmem:[%s3962_s12 + $0x18c] ss:$28 sps:$4 sm:$0xff]  }
 0x3d7   :  { %v1107_v56 = vadd.f32 %v1106_v55, %v1093_v43  ;;  %v2800_v43 = vld [vmem:[%s3962_s12 + $0x38] ss:$28 sps:$4 sm:$0xff]   ;;  %v2836_v55 = vld [vmem:[%s3962_s12 + $0x188] ss:$28 sps:$4 sm:$0xff]  }
 0x3d9   :  { %v1108_v58 = vpack.c.bf16 %v1107_v56, %v1107_v56  ;;  %v2844_v56 = vld [vmem:[%s3962_s12 + $0x1c4] ss:$28 sps:$4 sm:$0xff]  }
 0x3db   :  { %2592 = vmatmul.mubr.msk.bf16.vlgmr.msra.gmra.mrb[12].mxu1 %vm1128_vm5, %v1108_v58  ;;  %v2850_v58 = vld [vmem:[%s3962_s12 + $0x1fc] ss:$28 sps:$4 sm:$0xff]  }
 0x3dc   :  { %1242 = vmatpush1.bf16.msra.mxu1 %v2782_v57  ;;  %1273 = vmatprep.mubr.bf16.mxu1 %v3032_v42  ;;  %v2791_v42 = vld [vmem:[%s3960_s10 + $0x30] ss:$8 sps:$4 sm:$0xff]   ;;  %v2842_v57 = vld [vmem:[%s3962_s12 + $0x1c0] ss:$28 sps:$4 sm:$0xff]  }
 0x3dd   :  { %1243 = vmatprep.subr.bf16.mxu1 %v2787_v59  ;;  %v2848_v59 = vld [vmem:[%s3962_s12 + $0x1f8] ss:$28 sps:$4 sm:$0xff]  }
 0x3e0   :  { %1244 = vmatpush1.bf16.msra.mxu1 %v2785_v60  ;;  %v2856_v60 = vld [vmem:[%s3962_s12 + $0x234] ss:$28 sps:$4 sm:$0xff]  }
 0x3e1   :  { %1245 = vmatprep.subr.bf16.mxu1 %v2790_v61  ;;  %v2854_v61 = vld [vmem:[%s3962_s12 + $0x230] ss:$28 sps:$4 sm:$0xff]  }
 0x3e4   :  { %1246 = vmatpush1.bf16.msra.mxu1 %v2788_v62  ;;  %v2862_v62 = vld [vmem:[%s3962_s12 + $0x26c] ss:$28 sps:$4 sm:$0xff]  }
 0x3e5   :  { %1247 = vmatprep.subr.bf16.mxu1 %v2793_v63  ;;  %v2860_v63 = vld [vmem:[%s3962_s12 + $0x268] ss:$28 sps:$4 sm:$0xff]  }
 0x3e8   :  { %1248 = vmatpush1.bf16.msra.mxu1 %v2791_v42  ;;  %v2868_v42 = vld [vmem:[%s3962_s12 + $0x2a4] ss:$28 sps:$4 sm:$0xff]  }
 0x3e9   :  { %2027 = vmatprep.subr.bf16.mxu1 %v2796_v0  ;;  %v2866_v0 = vld [vmem:[%s3962_s12 + $0x2a0] ss:$28 sps:$4 sm:$0xff]  }
 0x4ae   :  { %v1170_v33 = vpop.f32.mrb[12].mxu1 }
 0x4af   :  { %v1171_v34 = vadd.f32 %v2391_v32, %v1170_v33  ;;  %v2593_v35 = vpop.f32.mrb[13].mxu1  ;;  %v2896_v32 = vld [vmem:[%s3962_s12 + $0x78] ss:$28 sps:$4 sm:$0xff]  }
 0x4b0   :  { %v1173_v36 = vpop.f32.mrb[14].mxu1  ;;  %v2901_v33 = vld [vmem:[%s3962_s12 + $0xb4] ss:$28 sps:$4 sm:$0xff]   ;;  %v2904_v35 = vld [vmem:[%s3962_s12 + $0xec] ss:$28 sps:$4 sm:$0xff]  }
 0x4b1   :  { %v1176_v37 = vmax.f32 %v1171_v34, 0.0  ;;  %v2594_v38 = vpop.f32.mrb[15].mxu1  ;;  %v2899_v34 = vld [vmem:[%s3962_s12 + $0xb0] ss:$28 sps:$4 sm:$0xff]   ;;  %v2902_v36 = vld [vmem:[%s3962_s12 + $0xe8] ss:$28 sps:$4 sm:$0xff]  }
 0x4b2   :  { %v2905_v38 = vld [vmem:[%s3962_s12 + $0x120] ss:$28 sps:$4 sm:$0xff]  }
 0x4b3   :  { %v1177_v40 = vpack.c.bf16 %v1176_v37, %v1176_v37  ;;  %v2907_v37 = vld [vmem:[%s3962_s12 + $0x124] ss:$28 sps:$4 sm:$0xff]  }
 0x4b5   :  { %2403 = vmatmul.mubr.msk.bf16.vlgmr.msra.gmra.mrb[16].mxu1 %vm1054_vm2, %v1177_v40  ;;  %v2908_v40 = vld [vmem:[%s3962_s12 + $0x158] ss:$28 sps:$4 sm:$0xff]  }
 0x4b6   :  { %2028 = vmatpush1.bf16.msra.mxu1 %v2794_v39  ;;  %v2910_v39 = vld [vmem:[%s3962_s12 + $0x15c] ss:$28 sps:$4 sm:$0xff]  }
 0x4b7   :  { %2029 = vmatprep.subr.bf16.mxu1 %v2802_v41  ;;  %v2913_v41 = vld [vmem:[%s3962_s12 + $0x194] ss:$28 sps:$4 sm:$0xff]  }
 0x4ba   :  { %2030 = vmatpush1.bf16.msra.mxu1 %v2800_v43  ;;  %v2911_v43 = vld [vmem:[%s3962_s12 + $0x190] ss:$28 sps:$4 sm:$0xff]  }
 0x4bb   :  { %2031 = vmatprep.subr.bf16.mxu1 %v2808_v44  ;;  %v2916_v44 = vld [vmem:[%s3962_s12 + $0x1cc] ss:$28 sps:$4 sm:$0xff]  }
 0x4be   :  { %2032 = vmatpush1.bf16.msra.mxu1 %v2806_v45  ;;  %v2914_v45 = vld [vmem:[%s3962_s12 + $0x1c8] ss:$28 sps:$4 sm:$0xff]  }
 0x4bf   :  { %2033 = vmatprep.subr.bf16.mxu1 %v2814_v46  ;;  %v2919_v46 = vld [vmem:[%s3962_s12 + $0x204] ss:$28 sps:$4 sm:$0xff]  }
 0x4c2   :  { %2034 = vmatpush1.bf16.msra.mxu1 %v2812_v47  ;;  %v2917_v47 = vld [vmem:[%s3962_s12 + $0x200] ss:$28 sps:$4 sm:$0xff]  }
 0x4c3   :  { %2035 = vmatprep.subr.bf16.mxu1 %v2820_v48  ;;  %v2922_v48 = vld [vmem:[%s3962_s12 + $0x23c] ss:$28 sps:$4 sm:$0xff]  }
 0x4c6   :  { %2036 = vmatpush1.bf16.msra.mxu1 %v2818_v49  ;;  %v2920_v49 = vld [vmem:[%s3962_s12 + $0x238] ss:$28 sps:$4 sm:$0xff]  }
 0x4c7   :  { %2037 = vmatprep.subr.bf16.mxu1 %v2826_v50  ;;  %v2925_v50 = vld [vmem:[%s3962_s12 + $0x274] ss:$28 sps:$4 sm:$0xff]  }
 0x4ca   :  { %2038 = vmatpush1.bf16.msra.mxu1 %v2824_v51  ;;  %v2923_v51 = vld [vmem:[%s3962_s12 + $0x270] ss:$28 sps:$4 sm:$0xff]  }
 0x4cb   :  { %2039 = vmatprep.subr.bf16.mxu1 %v2832_v52  ;;  %v2928_v52 = vld [vmem:[%s3962_s12 + $0x2ac] ss:$28 sps:$4 sm:$0xff]  }
 0x4ce   :  { %2040 = vmatpush1.bf16.msra.mxu1 %v2830_v53  ;;  %v2926_v53 = vld [vmem:[%s3962_s12 + $0x2a8] ss:$28 sps:$4 sm:$0xff]  }
 0x4cf   :  { %2041 = vmatprep.subr.bf16.mxu1 %v2838_v54  ;;  %v2931_v54 = vld [vmem:[%s3962_s12 + $0x2e4] ss:$28 sps:$4 sm:$0xff]  }
 0x4d2   :  { %2042 = vmatpush1.bf16.msra.mxu1 %v2836_v55  ;;  %v2929_v55 = vld [vmem:[%s3962_s12 + $0x2e0] ss:$28 sps:$4 sm:$0xff]  }
 0x4d3   :  { %2043 = vmatprep.subr.bf16.mxu1 %v2844_v56  ;;  %v2934_v56 = vld [vmem:[%s3962_s12 + $0x31c] ss:$28 sps:$4 sm:$0xff]  }
 0x4d6   :  { %2044 = vmatpush1.bf16.msra.mxu1 %v2842_v57  ;;  %v2932_v57 = vld [vmem:[%s3962_s12 + $0x318] ss:$28 sps:$4 sm:$0xff]  }
 0x4d7   :  { %2045 = vmatprep.subr.bf16.mxu1 %v2850_v58  ;;  %v2937_v58 = vld [vmem:[%s3962_s12 + $0x354] ss:$28 sps:$4 sm:$0xff]  }
 0x4da   :  { %2046 = vmatpush1.bf16.msra.mxu1 %v2848_v59  ;;  %v2935_v59 = vld [vmem:[%s3962_s12 + $0x350] ss:$28 sps:$4 sm:$0xff]  }
 0x4db   :  { %2047 = vmatprep.subr.bf16.mxu1 %v2856_v60  ;;  %v2938_v60 = vld [vmem:[%s3962_s12 + $0x1d8] ss:$28 sps:$4 sm:$0xff]  }
 0x4de   :  { %2048 = vmatpush1.bf16.msra.mxu1 %v2854_v61  ;;  %v2939_v61 = vld [vmem:[%s3962_s12 + $0x18] ss:$28 sps:$4 sm:$0xff]  }
 0x4df   :  { %2049 = vmatprep.subr.bf16.mxu1 %v2862_v62  ;;  %v2940_v62 = vld [vmem:[%s3962_s12 + $0x210] ss:$28 sps:$4 sm:$0xff]  }
 0x4e2   :  { %2050 = vmatpush1.bf16.msra.mxu1 %v2860_v63  ;;  %v2941_v63 = vld [vmem:[%s3962_s12 + $0x50] ss:$28 sps:$4 sm:$0xff]  }
 0x4e3   :  { %2051 = vmatprep.subr.bf16.mxu1 %v2868_v42  ;;  %v2942_v42 = vld [vmem:[%s3962_s12 + $0x248] ss:$28 sps:$4 sm:$0xff]  }
 0x4e6   :  { %2052 = vmatpush1.bf16.msra.mxu1 %v2866_v0  ;;  %v2943_v0 = vld [vmem:[%s3962_s12 + $0x88] ss:$28 sps:$4 sm:$0xff]  }
 0x4e7   :  { %2053 = vmatprep.subr.bf16.mxu1 %v2874_v1  ;;  %v2944_v1 = vld [vmem:[%s3962_s12 + $0x280] ss:$28 sps:$4 sm:$0xff]  }
 0x4ea   :  { %2054 = vmatpush1.bf16.msra.mxu1 %v2872_v2  ;;  %v2945_v2 = vld [vmem:[%s3962_s12 + $0xc0] ss:$28 sps:$4 sm:$0xff]  }
 0x4eb   :  { %2055 = vmatprep.subr.bf16.mxu1 %v2880_v3  ;;  %v2946_v3 = vld [vmem:[%s3962_s12 + $0x2b8] ss:$28 sps:$4 sm:$0xff]  }
 0x4ee   :  { %2056 = vmatpush1.bf16.msra.mxu1 %v2878_v4  ;;  %v2947_v4 = vld [vmem:[%s3962_s12 + $0xf8] ss:$28 sps:$4 sm:$0xff]  }
 0x4ef   :  { %2057 = vmatprep.subr.bf16.mxu1 %v2886_v7  ;;  %v2950_v7 = vld [vmem:[%s3962_s12 + $0x328] ss:$28 sps:$4 sm:$0xff]  }
 0x4f2   :  { %2058 = vmatpush1.bf16.msra.mxu1 %v2884_v10  ;;  %v2951_v10 = vld [vmem:[%s3962_s12 + $0x168] ss:$28 sps:$4 sm:$0xff]   ;;  %s3036_s12 = smov [#allocation4]  }
 0x4f3   :  { %2068 = vmatprep.subr.bf16.mxu1 %v2892_v14  ;;  %v1434_v14 = vsub.s32 4, %v3483_v8  ;;  %s2257_s23 = sshll.u32 %s3036_s12, 4  ;;  %s2258_s23 = int_to_ptr.vmem [resolvable:$true] %s2257_s23 }
 0x4f4   :  { %s2984_s13 = scalar_lea.vmem %s2258_s23, 128  ;;  %p2989_p1 = scmp.lt.s32.totalorder %s2258_s23, %s2258_s23 }
 0x4f5   :  { %p2985_p0 = scmp.ne.s32.totalorder %s2258_s23, %s2984_s13  ;;  %p2990_p2 = scmp.lt.s32.totalorder %s2984_s13, %s2984_s13 }
 0x4f7   :  { %p2991_p3 = por %p2990_p2, %p2989_p1 }
 0x4f9   :  { %p2992_p4 = pnand %p2991_p3, %p2985_p0 }
 0x588   :  { %v1275_v18 = vpop.f32.mrb[16].mxu1 }
 0x589   :  { %v1276_v19 = vadd.f32 %v1275_v18, %v1191_v16  ;;  %v1277_v20 = vpop.f32.mrb[17].mxu1  ;;  %v1438_v16 = vsub.s32 5, %v3483_v8  ;;  %v1435_v18 = vrot.slane %v3910_v15, %v1434_v14 }
 0x58a   :  { %v1278_v21 = vadd.f32 %v1277_v20, %v1195_v17  ;;  %v1279_v22 = vpop.f32.mrb[18].mxu1  ;;  %v1419_v17 = vrot.slane %v3910_v15, %v3486_v9 }
 0x58b   :  { %v1282_v23 = vmax.f32 %v1276_v19, 0.0  ;;  %v1280_v24 = vpop.f32.mrb[19].mxu1  ;;  %v1423_v19 = vrot.slane %v3910_v15, %v3492_v11  ;;  %v1439_v20 = vrot.slane %v3910_v15, %v1438_v16 }
 0x58c   :  { %v1283_v25 = vmax.f32 %v1278_v21, 0.0 }
 0x58d   :  { %v3758_v28 = vpack.c.bf16 %v1282_v23, %v1282_v23 }
 0x58e   :  { %v3753_v26 = vpack.c.bf16 %v1283_v25, %v1283_v25 }
 0x590   :  { %2059 = vmatprep.mubr.bf16.mxu1 %v3753_v26  ;;  %2141 = vmatprep.mubr.bf16.mxu0 %v3753_v26 }
 0x591   :  { %2060 = vmatmul.mubr.bf16.vlgmr.msra.gmra.mrb[20].mxu1 %v3758_v28  ;;  %2142 = vmatmul.mubr.bf16.vlgmr.msra.gmra.mrb[4].mxu0 %v3758_v28 }
 0x592   :  { %2069 = vmatpush1.bf16.msra.mxu1 %v2890_v27  ;;  %2100 = vmatprep.mubr.bf16.mxu1 %v3753_v26 }
 0x593   :  { %2070 = vmatprep.subr.bf16.mxu1 %v2895_v29 }
 0x596   :  { %2071 = vmatpush1.bf16.msra.mxu1 %v2893_v30 }
 0x597   :  { %2072 = vmatprep.subr.bf16.mxu1 %v2898_v31 }
 0x59a   :  { %2073 = vmatpush1.bf16.msra.mxu1 %v2896_v32 }
 0x59b   :  { %2074 = vmatprep.subr.bf16.mxu1 %v2901_v33 }
 0x59e   :  { %2075 = vmatpush1.bf16.msra.mxu1 %v2899_v34 }
 0x59f   :  { %2076 = vmatprep.subr.bf16.mxu1 %v2904_v35 }
 0x5a2   :  { %2077 = vmatpush1.bf16.msra.mxu1 %v2902_v36 }
 0x5a3   :  { %2078 = vmatprep.subr.bf16.mxu1 %v2907_v37 }
 0x5a6   :  { %2079 = vmatpush1.bf16.msra.mxu1 %v2905_v38 }
 0x5a7   :  { %2080 = vmatprep.subr.bf16.mxu1 %v2910_v39 }
 0x5aa   :  { %2081 = vmatpush1.bf16.msra.mxu1 %v2908_v40 }
 0x5ab   :  { %2082 = vmatprep.subr.bf16.mxu1 %v2913_v41 }
 0x5ae   :  { %2083 = vmatpush1.bf16.msra.mxu1 %v2911_v43 }
 0x5af   :  { %2084 = vmatprep.subr.bf16.mxu1 %v2916_v44 }
 0x5b2   :  { %2085 = vmatpush1.bf16.msra.mxu1 %v2914_v45 }
 0x5b3   :  { %2086 = vmatprep.subr.bf16.mxu1 %v2919_v46 }
 0x5b6   :  { %2087 = vmatpush1.bf16.msra.mxu1 %v2917_v47 }
 0x5b7   :  { %2088 = vmatprep.subr.bf16.mxu1 %v2922_v48 }
 0x5ba   :  { %2089 = vmatpush1.bf16.msra.mxu1 %v2920_v49 }
 0x5bb   :  { %2090 = vmatprep.subr.bf16.mxu1 %v2925_v50 }
 0x5be   :  { %2091 = vmatpush1.bf16.msra.mxu1 %v2923_v51 }
 0x5bf   :  { %2092 = vmatprep.subr.bf16.mxu1 %v2928_v52 }
 0x5c2   :  { %2093 = vmatpush1.bf16.msra.mxu1 %v2926_v53 }
 0x5c3   :  { %2094 = vmatprep.subr.bf16.mxu1 %v2931_v54 }
 0x5c6   :  { %2095 = vmatpush1.bf16.msra.mxu1 %v2929_v55 }
 0x5c7   :  { %2096 = vmatprep.subr.bf16.mxu1 %v2934_v56 }
 0x5ca   :  { %2097 = vmatpush1.bf16.msra.mxu1 %v2932_v57 }
 0x5cb   :  { %2098 = vmatprep.subr.bf16.mxu1 %v2937_v58 }
 0x5ce   :  { %2099 = vmatpush1.bf16.msra.mxu1 %v2935_v59 }
 0x5cf   :  { %2553 = vmatprep.subr.bf16.mxu1 %v2938_v60 }
 0x5d1   :  { %2101 = vmatmul.mubr.bf16.vlgmr.msra.gmra.mrb[24].mxu1 %v3758_v28 }
 0x5d2   :  { %2554 = vmatpush3.bf16.msra.mxu1 %v2939_v61  ;;  %2182 = vmatprep.mubr.bf16.mxu1 %v3753_v26 }
 0x5d3   :  { %2555 = vmatprep.subr.bf16.mxu1 %v2940_v62 }
 0x5d6   :  { %2556 = vmatpush3.bf16.msra.mxu1 %v2941_v63 }
 0x5d7   :  { %2557 = vmatprep.subr.bf16.mxu1 %v2942_v42 }
 0x5da   :  { %2558 = vmatpush3.bf16.msra.mxu1 %v2943_v0 }
 0x5db   :  { %2559 = vmatprep.subr.bf16.mxu1 %v2944_v1 }
 0x5de   :  { %2560 = vmatpush3.bf16.msra.mxu1 %v2945_v2 }
 0x5df   :  { %2561 = vmatprep.subr.bf16.mxu1 %v2946_v3 }
 0x5e2   :  { %2562 = vmatpush3.bf16.msra.mxu1 %v2947_v4 }
 0x5e3   :  { %2563 = vmatprep.subr.bf16.mxu1 %v2948_v5 }
 0x5e6   :  { %2564 = vmatpush3.bf16.msra.mxu1 %v2949_v6 }
 0x5e7   :  { %2565 = vmatprep.subr.bf16.mxu1 %v2950_v7 }
 0x5ea   :  { %2566 = vmatpush3.bf16.msra.mxu1 %v2951_v10 }
 0x5eb   :  { %2567 = vmatprep.subr.bf16.mxu1 %v2952_v12 }
 0x5ee   :  { %2568 = vmatpush3.bf16.msra.mxu1 %v2953_v13 }
 0x5f1   :  { %2183 = vmatmul.mubr.bf16.vlgmr.msra.gmra.mrb[28].mxu1 %v3758_v28 }
 0x664   :  { %v2061_v21 = vpop.f32.mrb[20].mxu1  ;;  %v2143_v22 = vpop.f32.mrb[4].mxu0 }
 0x665   :  { %v2062_v23 = vadd.f32 %v2061_v21, %v1419_v17  ;;  %v2144_v24 = vadd.f32 %v2143_v22, %v1435_v18  ;;  %v2063_v25 = vpop.f32.mrb[21].mxu1  ;;  %v2145_v26 = vpop.f32.mrb[5].mxu0 }
 0x666   :  { %v2064_v27 = vadd.f32 %v2063_v25, %v1423_v19  ;;  %v2146_v28 = vadd.f32 %v2145_v26, %v1439_v20  ;;  %v2065_v29 = vpop.f32.mrb[22].mxu1  ;;  %v2147_v9 = vpop.f32.mrb[6].mxu0 }
 0x667   :  { %2995 = shalt.err (!%p2992_p4)
}
 0x668   :  { %s2996_s26 = scalar_lea.hbm %s3965_s15, 128 }
 0x669   :  { %p2997_p5 = scmp.ne.s32.totalorder %s3965_s15, %s2996_s26  ;;  %p3000_p6 = scmp.lt.u32.totalorder %s2996_s26, %s3965_s15 }
 0x66b   :  { %p3002_p7 = pnand %p3000_p6, %p2997_p5 }
 0x66d   :  { %3005 = shalt.err (!%p3002_p7)
}
 0x66e   :  { %2260 = dma.vmem_to_hbm [thread:$0]  %s2258_s23, 128, %s3965_s15, [#allocation5]   ;;  %v2516_v11 = vmul.f32 -1.442695, %v2062_v23  ;;  %v2520_v30 = vmul.f32 -1.442695, %v2144_v24 }
 0x66f   :  { %v2066_v31 = vpop.f32.mrb[23].mxu1  ;;  %v2148_v32 = vpop.f32.mrb[7].mxu0  ;;  %v2517_v33 = vmul.f32 -1.442695, %v2064_v27  ;;  %v2521_v34 = vmul.f32 -1.442695, %v2146_v28 }
 0x670   :  { %2956 = vpow2.f32 %v2516_v11  ;;  %v1426_v48 = vsub.s32 2, %v3483_v8  ;;  %v1430_v49 = vsub.s32 3, %v3483_v8  ;;  %v1442_v0 = vsub.s32 6, %v3483_v8  ;;  %s3037_s15 = smov [#allocation2]  }
 0x671   :  { %2958 = vpow2.f32 %v2520_v30  ;;  %s2247_s0 = sshll.u32 %s3037_s15, 4  ;;  %s2248_s0 = int_to_ptr.vmem [resolvable:$true] %s2247_s0 }
 0x672   :  { %2960 = vpow2.f32 %v2517_v33  ;;  %v1427_v50 = vrot.slane %v3910_v15, %v1426_v48  ;;  %v1431_v51 = vrot.slane %v3910_v15, %v1430_v49  ;;  %v1443_v3 = vrot.slane %v3910_v15, %v1442_v0  ;;  %s3006_s1 = scalar_lea.vmem %s2248_s0, 896  ;;  %p3011_p9 = scmp.lt.s32.totalorder %s2248_s0, %s2248_s0 }
 0x673   :  { %2962 = vpow2.f32 %v2521_v34  ;;  %p3007_p8 = scmp.ne.s32.totalorder %s2248_s0, %s3006_s1  ;;  %p3012_p10 = scmp.lt.s32.totalorder %s3006_s1, %s3006_s1 }
 0x675   :  { %p3013_p11 = por %p3012_p10, %p3011_p9 }
 0x677   :  { %p3014_p12 = pnand %p3013_p11, %p3007_p8 }
 0x67a   :  { %v2957_v35 = vpop.eup %2956 }
 0x67b   :  { %v2959_v36 = vpop.eup %2958  ;;  %v2211_v37 = vadd.f32 1.0, %v2957_v35 }
 0x67c   :  { %v2961_v38 = vpop.eup %2960  ;;  %v2215_v39 = vadd.f32 1.0, %v2959_v36 }
 0x67d   :  { %v2963_v40 = vpop.eup %2962  ;;  %2964 = vrcp.f32 %v2211_v37  ;;  %v2212_v41 = vadd.f32 1.0, %v2961_v38 }
 0x67e   :  { %2966 = vrcp.f32 %v2215_v39  ;;  %v2216_v43 = vadd.f32 1.0, %v2963_v40 }
 0x67f   :  { %2968 = vrcp.f32 %v2212_v41 }
 0x680   :  { %2970 = vrcp.f32 %v2216_v43 }
 0x687   :  { %v2965_v44 = vpop.eup %2964 }
 0x688   :  { %v2967_v45 = vpop.eup %2966  ;;  %2232 = vst [vmem:[#allocation2] sm:$0xff] %v2965_v44 }
 0x689   :  { %v2969_v46 = vpop.eup %2968  ;;  %2236 = vst [vmem:[#allocation2 + $0x20] sm:$0xff] %v2967_v45 }
 0x68a   :  { %v2971_v47 = vpop.eup %2970  ;;  %2233 = vst [vmem:[#allocation2 + $0x8] sm:$0xff] %v2969_v46 }
 0x68b   :  { %2237 = vst [vmem:[#allocation2 + $0x28] sm:$0xff] %v2971_v47 }
 0x6a4   :  { %v2102_v52 = vpop.f32.mrb[24].mxu1 }
 0x6a5   :  { %v2103_v53 = vadd.f32 %v2102_v52, %v1427_v50  ;;  %v2104_v54 = vpop.f32.mrb[25].mxu1 }
 0x6a6   :  { %v2105_v55 = vadd.f32 %v2104_v54, %v1431_v51  ;;  %v2106_v56 = vpop.f32.mrb[26].mxu1 }
 0x6a7   :  { %v2518_v57 = vmul.f32 -1.442695, %v2103_v53  ;;  %v2107_v58 = vpop.f32.mrb[27].mxu1 }
 0x6a8   :  { %v2519_v59 = vmul.f32 -1.442695, %v2105_v55 }
 0x6a9   :  { %2972 = vpow2.f32 %v2518_v57 }
 0x6aa   :  { %2974 = vpow2.f32 %v2519_v59 }
 0x6b3   :  { %v2973_v60 = vpop.eup %2972 }
 0x6b4   :  { %v2975_v61 = vpop.eup %2974  ;;  %v2213_v62 = vadd.f32 1.0, %v2973_v60 }
 0x6b5   :  { %v2214_v63 = vadd.f32 1.0, %v2975_v61 }
 0x6b6   :  { %2976 = vrcp.f32 %v2213_v62 }
 0x6b7   :  { %2978 = vrcp.f32 %v2214_v63 }
 0x6c0   :  { %v2977_v42 = vpop.eup %2976 }
 0x6c1   :  { %v2979_v1 = vpop.eup %2978  ;;  %2234 = vst [vmem:[#allocation2 + $0x10] sm:$0xff] %v2977_v42 }
 0x6c2   :  { %2235 = vst [vmem:[#allocation2 + $0x18] sm:$0xff] %v2979_v1 }
 0x6c4   :  { %v2569_v2 = vpop.f32.mrb[28].mxu1 }
 0x6c5   :  { %v2570_v4 = vpop.f32.mrb[29].mxu1 }
 0x6c6   :  { %v2571_v5 = vadd.f32 %v2570_v4, %v2569_v2  ;;  %v2572_v6 = vpop.f32.mrb[30].mxu1 }
 0x6c7   :  { %v2573_v7 = vpop.f32.mrb[31].mxu1 }
 0x6c8   :  { %v2185_v10 = vadd.f32 %v2571_v5, %v1443_v3 }
 0x6ca   :  { %v2522_v12 = vmul.f32 -1.442695, %v2185_v10 }
 0x6cc   :  { %2980 = vpow2.f32 %v2522_v12 }
 0x6d6   :  { %v2981_v13 = vpop.eup %2980 }
 0x6d7   :  { %v2217_v14 = vadd.f32 1.0, %v2981_v13 }
 0x6d9   :  { %2982 = vrcp.f32 %v2217_v14 }
 0x6e3   :  { %v2983_v8 = vpop.eup %2982 }
 0x6e4   :  { %2238 = vst.msk [vmem:[#allocation2 + $0x30] sm:$0xff] %vm666_vm0, %v2983_v8 }
 0x6e5   :  { %3017 = shalt.err (!%p3014_p12)
}
 0x6e6   :  { %s3018_s11 = scalar_lea.hbm %s3964_s14, 896 }
 0x6e7   :  { %p3019_p13 = scmp.ne.s32.totalorder %s3964_s14, %s3018_s11  ;;  %p3022_p0 = scmp.lt.u32.totalorder %s3018_s11, %s3964_s14 }
 0x6e9   :  { %p3024_p1 = pnand %p3022_p0, %p3019_p13 }
 0x6eb   :  { %3027 = shalt.err (!%p3024_p1)
}
 0x6ec   :  { %2250 = dma.vmem_to_hbm [thread:$0]  %s2248_s0, 896, %s3964_s14, [#allocation3]  }
 0x6ed   :  { %3028 = dma.done.wait [#allocation3], 896  }
 0x6ee   :  { %3029 = vsyncadd [#allocation3], 4294966400 }
 0x6ef   :  { %3030 = dma.done.wait [#allocation5], 128  }
 0x6f0   :  { %3031 = vsyncadd [#allocation5], 4294967168 }
 0x6f1   :  { %2267 = vsyncpa [#allocation3], 1 }
 0x6f2   :  { %2268 = vsyncpa [#allocation5], 1 }

</bundles_post_ra>
